<compile_context>
chip_gen: v7x
topology: tpu7x:2x2x1
jax: 0.10.0
libtpu: 0.0.40
codegen_flags: <defaults>
</compile_context>

<pallas_src>
import functools

import jax
import jax.numpy as jnp
from jax.experimental import pallas as pl
from jax.experimental.pallas import tpu as pltpu


PAD_IDX = 1


def _pick_tile(dim, candidates):
    """Largest candidate tile that evenly divides `dim`, else the full dim."""
    for t in candidates:
        if t <= dim and dim % t == 0:
            return t
    return dim


def _bf16(v):
    """Cast to bf16 only if needed (weights/activations may already be bf16)."""
    return v if v.dtype == jnp.bfloat16 else v.astype(jnp.bfloat16)


def _nbytes(shape, dtype):
    n = 1
    for d in shape:
        n *= int(d)
    return n * jnp.dtype(dtype).itemsize


def _mosaic_params(semantics, working_set_bytes):
    """Explicit scoped-VMEM limit: 2x (double-buffer) + headroom, v7x-safe cap."""
    vmem = int(working_set_bytes * 2.5) + (2 << 20)
    vmem = max(16 << 20, min(vmem, 56 << 20))
    return pltpu.CompilerParams(dimension_semantics=semantics,
                                vmem_limit_bytes=vmem)


# --------------------------------------------------------------------------
# Kernel: tiled matmul + bias (+ optional activation), selectable out dtype
# --------------------------------------------------------------------------

def _dense_act_kernel(x_ref, w_ref, b_ref, o_ref, acc_ref, *, activation):
    @pl.when(pl.program_id(2) == 0)
    def _():
        acc_ref[...] = jnp.zeros_like(acc_ref)

    acc_ref[...] += jnp.dot(_bf16(x_ref[...]), _bf16(w_ref[...]),
                            preferred_element_type=jnp.float32)

    @pl.when(pl.program_id(2) == pl.num_programs(2) - 1)
    def _():
        y = acc_ref[...] + b_ref[...]
        if activation == "gelu":
            # TODO(synk): HF RoBERTa uses exact erf-GELU; tanh approximation
            # kept to guarantee clean Mosaic lowering (~1e-3 close).
            c = jnp.float32(0.7978845608028654)  # sqrt(2/pi)
            y = 0.5 * y * (1.0 + jnp.tanh(c * (y + 0.044715 * y * y * y)))
        elif activation == "tanh":
            y = jnp.tanh(y)
        o_ref[...] = y.astype(o_ref.dtype)


def dense_act(x, w, b, activation="none", out_dtype=jnp.float32):
    """y = act(x @ w + b).  x:(M,K) w:(K,N) bf16, b:(N,)."""
    M, K = x.shape
    N = w.shape[1]
    tm = _pick_tile(M, (512, 256, 128))
    tn = _pick_tile(N, (512, 256, 128))
    tk = _pick_tile(K, (512, 256, 128))
    ws = (_nbytes((tm, tk), x.dtype) + _nbytes((tk, tn), w.dtype)
          + _nbytes((1, tn), jnp.float32) + _nbytes((tm, tn), out_dtype)
          + _nbytes((tm, tn), jnp.float32))
    return pl.pallas_call(
        functools.partial(_dense_act_kernel, activation=activation),
        out_shape=jax.ShapeDtypeStruct((M, N), out_dtype),
        grid=(M // tm, N // tn, K // tk),
        in_specs=[
            pl.BlockSpec((tm, tk), lambda i, j, k: (i, k)),
            pl.BlockSpec((tk, tn), lambda i, j, k: (k, j)),
            pl.BlockSpec((1, tn), lambda i, j, k: (0, j)),
        ],
        out_specs=pl.BlockSpec((tm, tn), lambda i, j, k: (i, j)),
        scratch_shapes=[pltpu.VMEM((tm, tn), jnp.float32)],
        compiler_params=_mosaic_params(("parallel", "parallel", "arbitrary"), ws),
    )(x, w, b.reshape(1, N))


# --------------------------------------------------------------------------
# Kernel: tiled matmul + bias + residual + LayerNorm (full-width N)
# --------------------------------------------------------------------------

def _dense_res_ln_kernel(x_ref, w_ref, b_ref, r_ref, g_ref, bb_ref,
                         o_ref, acc_ref, *, eps):
    @pl.when(pl.program_id(1) == 0)
    def _():
        acc_ref[...] = jnp.zeros_like(acc_ref)

    acc_ref[...] += jnp.dot(_bf16(x_ref[...]), _bf16(w_ref[...]),
                            preferred_element_type=jnp.float32)

    @pl.when(pl.program_id(1) == pl.num_programs(1) - 1)
    def _():
        y = acc_ref[...] + b_ref[...] + r_ref[...]
        mu = jnp.mean(y, axis=-1, keepdims=True)
        yc = y - mu
        var = jnp.mean(yc * yc, axis=-1, keepdims=True)
        inv = jax.lax.rsqrt(var + eps)
        o_ref[...] = (yc * inv) * g_ref[...] + bb_ref[...]


def dense_residual_ln(x, w, b, residual, gamma, beta, eps=1e-5):
    """y = LayerNorm(x @ w + b + residual).  N kept full-width for the LN."""
    M, K = x.shape
    N = w.shape[1]
    tm = _pick_tile(M, (512, 256, 128))
    tk = _pick_tile(K, (512, 256, 128))
    ws = (_nbytes((tm, tk), x.dtype) + _nbytes((tk, N), w.dtype)
          + _nbytes((tm, N), jnp.float32) * 3 + _nbytes((1, N), jnp.float32) * 3)
    return pl.pallas_call(
        functools.partial(_dense_res_ln_kernel, eps=eps),
        out_shape=jax.ShapeDtypeStruct((M, N), jnp.float32),
        grid=(M // tm, K // tk),
        in_specs=[
            pl.BlockSpec((tm, tk), lambda i, k: (i, k)),
            pl.BlockSpec((tk, N), lambda i, k: (k, 0)),
            pl.BlockSpec((1, N), lambda i, k: (0, 0)),
            pl.BlockSpec((tm, N), lambda i, k: (i, 0)),
            pl.BlockSpec((1, N), lambda i, k: (0, 0)),
            pl.BlockSpec((1, N), lambda i, k: (0, 0)),
        ],
        out_specs=pl.BlockSpec((tm, N), lambda i, k: (i, 0)),
        scratch_shapes=[pltpu.VMEM((tm, N), jnp.float32)],
        compiler_params=_mosaic_params(("parallel", "arbitrary"), ws),
    )(x, w, b.reshape(1, N), residual, gamma.reshape(1, N), beta.reshape(1, N))


# --------------------------------------------------------------------------
# Kernel: fused FFN  (gelu(x@Wi+bi) @ Wf + bf + x -> LayerNorm)
#   intermediate (tm, ti) tiles live only in VMEM; reduction over I tiles;
#   resident x block is cast to bf16 ONCE into a scratch at step 0.
# --------------------------------------------------------------------------

def _ffn_kernel(x_ref, wi_ref, bi_ref, wf_ref, bf_ref, g_ref, bb_ref,
                o_ref, acc_ref, xb_ref, *, eps):
    @pl.when(pl.program_id(1) == 0)
    def _():
        acc_ref[...] = jnp.zeros_like(acc_ref)
        xb_ref[...] = _bf16(x_ref[...])

    h = jnp.dot(xb_ref[...], _bf16(wi_ref[...]),
                preferred_element_type=jnp.float32) + bi_ref[...]
    # TODO(synk): tanh-approx GELU (HF uses exact erf GELU).
    c = jnp.float32(0.7978845608028654)
    h = 0.5 * h * (1.0 + jnp.tanh(c * (h + 0.044715 * h * h * h)))
    acc_ref[...] += jnp.dot(h.astype(jnp.bfloat16), _bf16(wf_ref[...]),
                            preferred_element_type=jnp.float32)

    @pl.when(pl.program_id(1) == pl.num_programs(1) - 1)
    def _():
        y = acc_ref[...] + bf_ref[...] + x_ref[...]     # residual = kernel input
        mu = jnp.mean(y, axis=-1, keepdims=True)
        yc = y - mu
        var = jnp.mean(yc * yc, axis=-1, keepdims=True)
        inv = jax.lax.rsqrt(var + eps)
        o_ref[...] = (yc * inv) * g_ref[...] + bb_ref[...]


def ffn_fused(x, wi, bi, wf, bf, gamma, beta, eps=1e-5):
    M, H = x.shape
    I = wi.shape[1]
    tm = _pick_tile(M, (256, 128))
    ti = _pick_tile(I, (512, 256, 128))
    ws = (_nbytes((tm, H), jnp.float32) * 2 + _nbytes((tm, H), jnp.bfloat16)
          + _nbytes((H, ti), wi.dtype) + _nbytes((ti, H), wf.dtype)
          + _nbytes((tm, ti), jnp.float32) + _nbytes((tm, H), jnp.float32))
    return pl.pallas_call(
        functools.partial(_ffn_kernel, eps=eps),
        out_shape=jax.ShapeDtypeStruct((M, H), jnp.float32),
        grid=(M // tm, I // ti),
        in_specs=[
            pl.BlockSpec((tm, H), lambda i, j: (i, 0)),
            pl.BlockSpec((H, ti), lambda i, j: (0, j)),
            pl.BlockSpec((1, ti), lambda i, j: (0, j)),
            pl.BlockSpec((ti, H), lambda i, j: (j, 0)),
            pl.BlockSpec((1, H), lambda i, j: (0, 0)),
            pl.BlockSpec((1, H), lambda i, j: (0, 0)),
            pl.BlockSpec((1, H), lambda i, j: (0, 0)),
        ],
        out_specs=pl.BlockSpec((tm, H), lambda i, j: (i, 0)),
        scratch_shapes=[pltpu.VMEM((tm, H), jnp.float32),
                        pltpu.VMEM((tm, H), jnp.bfloat16)],
        compiler_params=_mosaic_params(("parallel", "arbitrary"), ws),
    )(x, wi, bi.reshape(1, I), wf, bf.reshape(1, H),
      gamma.reshape(1, H), beta.reshape(1, H))


# --------------------------------------------------------------------------
# Kernel: attention — lane-dense I/O.
#   qkv: (B, S, 3H) bf16  (columns [0:H)=Q, [H:2H)=K, [2H:3H)=V, heads
#   concatenated along the lane axis) -> out: (B, S, H) bf16.
#   Head split/merge happens via zero-cost static ref slices inside the
#   kernel; one head's (S, S) f32 score tile is live at a time.
# --------------------------------------------------------------------------

def _attention_kernel(qkv_ref, m_ref, o_ref, *, nH, dH, scale):
    H = nH * dH
    neg = (1.0 - m_ref[0]) * jnp.float32(-1e9)          # (1, S) additive mask
    # TODO(synk): for long S, tile the KV axis flash-style with running
    # max/sum and group heads onto an extra grid axis.
    for h in range(nH):                                   # static unrolled loop
        q = qkv_ref[0, :, h * dH:(h + 1) * dH]            # (S, dH) bf16
        k = qkv_ref[0, :, H + h * dH:H + (h + 1) * dH]
        v = qkv_ref[0, :, 2 * H + h * dH:2 * H + (h + 1) * dH]
        s = jax.lax.dot_general(q, k, (((1,), (1,)), ((), ())),
                                preferred_element_type=jnp.float32)
        s = s * jnp.float32(scale) + neg
        s = s - jnp.max(s, axis=-1, keepdims=True)
        p = jnp.exp(s)
        p = p * pl.reciprocal(jnp.sum(p, axis=-1, keepdims=True), approx=True)
        ctx = jnp.dot(p.astype(jnp.bfloat16), v,
                      preferred_element_type=jnp.float32)
        o_ref[0, :, h * dH:(h + 1) * dH] = ctx.astype(o_ref.dtype)


def attention(qkv3, mask3, *, nH, scale):
    """qkv3: (B, S, 3H) bf16, mask3: (B, 1, S) f32 -> (B, S, H) bf16."""
    B, S, threeH = qkv3.shape
    H = threeH // 3
    dH = H // nH
    ws = (_nbytes((1, S, threeH), jnp.bfloat16) + _nbytes((1, S, H), jnp.bfloat16)
          + _nbytes((1, 1, S), jnp.float32) + 4 * _nbytes((S, S), jnp.float32))
    return pl.pallas_call(
        functools.partial(_attention_kernel, nH=nH, dH=dH, scale=scale),
        out_shape=jax.ShapeDtypeStruct((B, S, H), jnp.bfloat16),
        grid=(B,),
        in_specs=[
            pl.BlockSpec((1, S, threeH), lambda b: (b, 0, 0)),
            pl.BlockSpec((1, 1, S), lambda b: (b, 0, 0)),
        ],
        out_specs=pl.BlockSpec((1, S, H), lambda b: (b, 0, 0)),
        compiler_params=_mosaic_params(("parallel",), ws),
    )(qkv3, mask3)


# --------------------------------------------------------------------------
# Kernel: LayerNorm (no residual) — embeddings
# --------------------------------------------------------------------------

def _ln_kernel(x_ref, g_ref, b_ref, o_ref, *, eps):
    x = x_ref[...]
    mu = jnp.mean(x, axis=-1, keepdims=True)
    xc = x - mu
    var = jnp.mean(xc * xc, axis=-1, keepdims=True)
    inv = jax.lax.rsqrt(var + eps)
    o_ref[...] = (xc * inv) * g_ref[...] + b_ref[...]


def layernorm(x, gamma, beta, eps=1e-5):
    M, H = x.shape
    tm = _pick_tile(M, (512, 256, 128))
    ws = _nbytes((tm, H), jnp.float32) * 2 + _nbytes((1, H), jnp.float32) * 2
    return pl.pallas_call(
        functools.partial(_ln_kernel, eps=eps),
        out_shape=jax.ShapeDtypeStruct((M, H), jnp.float32),
        grid=(M // tm,),
        in_specs=[
            pl.BlockSpec((tm, H), lambda i: (i, 0)),
            pl.BlockSpec((1, H), lambda i: (0, 0)),
            pl.BlockSpec((1, H), lambda i: (0, 0)),
        ],
        out_specs=pl.BlockSpec((tm, H), lambda i: (i, 0)),
        compiler_params=_mosaic_params(("parallel",), ws),
    )(x, gamma.reshape(1, H), beta.reshape(1, H))


# --------------------------------------------------------------------------
# Kernel: weighted BCE loss
#   NOTE: intentionally mirrors the reference module's reduction order
#   (BCE reduced to a scalar mean FIRST, then weighted by labels and
#   re-averaged), i.e. mean(bce) * (10*mean(z) + mean(1-z)).
# --------------------------------------------------------------------------

def _loss_kernel(logits_ref, labels_ref, o_ref):
    x = logits_ref[...]
    z = labels_ref[...]
    bce = jnp.maximum(x, 0.0) - x * z + jnp.log(1.0 + jnp.exp(-jnp.abs(x)))
    loss = jnp.mean(bce)                       # scalar, as in the reference
    pos = loss * z * jnp.float32(10.0)         # positive_weight = 10.0
    neg = loss * (1.0 - z) * jnp.float32(1.0)  # negative_weight = 1.0
    combined = jnp.mean(pos) + jnp.mean(neg)
    o_ref[...] = combined * jnp.ones((1, 1), jnp.float32)


def weighted_bce_loss(logits, labels):
    B, N = logits.shape
    return pl.pallas_call(
        _loss_kernel,
        out_shape=jax.ShapeDtypeStruct((1, 1), jnp.float32),
        grid=(1,),
        in_specs=[pl.BlockSpec((B, N), lambda i: (0, 0)),
                  pl.BlockSpec((B, N), lambda i: (0, 0))],
        out_specs=pl.BlockSpec((1, 1), lambda i: (0, 0)),
    )(logits, labels)


# --------------------------------------------------------------------------
# Tiny RoBERTa model (synthetic weights), forward pass
# --------------------------------------------------------------------------

def init_params(key, vocab, max_pos, H, nH, I, L, num_labels):
    def nrm(k, shape):
        return 0.02 * jax.random.normal(k, shape, jnp.float32)

    def nrm16(k, shape):          # matmul weights pre-cast to bf16 ONCE
        return nrm(k, shape).astype(jnp.bfloat16)

    keys = iter(jax.random.split(key, 8 + 8 * L))
    p = {
        "word_emb": nrm(next(keys), (vocab, H)),
        "pos_emb": nrm(next(keys), (max_pos, H)),
        "type_emb": nrm(next(keys), (1, H)),
        "emb_ln_g": jnp.ones((H,), jnp.float32),
        "emb_ln_b": jnp.zeros((H,), jnp.float32),
        "layers": [],
        "cls_dense_w": nrm16(next(keys), (H, H)),
        "cls_dense_b": jnp.zeros((H,), jnp.float32),
        "cls_out_w": nrm16(next(keys), (H, num_labels)),
        "cls_out_b": jnp.zeros((num_labels,), jnp.float32),
    }
    for _ in range(L):
        p["layers"].append({
            # fused Q/K/V projection: columns [0:H)=Q, [H:2H)=K, [2H:3H)=V
            "qkv_w": nrm16(next(keys), (H, 3 * H)),
            "qkv_b": jnp.zeros((3 * H,), jnp.float32),
            "o_w": nrm16(next(keys), (H, H)), "o_b": jnp.zeros((H,), jnp.float32),
            "attn_ln_g": jnp.ones((H,), jnp.float32),
            "attn_ln_b": jnp.zeros((H,), jnp.float32),
            "i_w": nrm16(next(keys), (H, I)), "i_b": jnp.zeros((I,), jnp.float32),
            "f_w": nrm16(next(keys), (I, H)), "f_b": jnp.zeros((H,), jnp.float32),
            "out_ln_g": jnp.ones((H,), jnp.float32),
            "out_ln_b": jnp.zeros((H,), jnp.float32),
        })
    return p


def roberta_forward(params, input_ids, attention_mask, labels=None, *, H, nH):
    B, S = input_ids.shape
    dH = H // nH
    scale = 1.0 / float(dH) ** 0.5

    # ---- embeddings (gathers are JAX glue; layernorm is a Pallas kernel) ----
    not_pad = (input_ids != PAD_IDX).astype(jnp.int32)
    position_ids = jnp.cumsum(not_pad, axis=1) * not_pad + PAD_IDX
    emb = (params["word_emb"][input_ids]
           + params["pos_emb"][position_ids]
           + params["type_emb"][0][None, None, :])
    x = emb.reshape(B * S, H).astype(jnp.float32)
    x = layernorm(x, params["emb_ln_g"], params["emb_ln_b"])

    mask3 = attention_mask.astype(jnp.float32).reshape(B, 1, S)

    # ---- encoder layers ----
    for lyr in params["layers"]:
        # fused QKV projection, emitted straight in bf16 (matmul-only consumer)
        qkv = dense_act(x, lyr["qkv_w"], lyr["qkv_b"], out_dtype=jnp.bfloat16)
        qkv3 = qkv.reshape(B, S, 3 * H)                    # free reshape, no transpose
        ctx = attention(qkv3, mask3, nH=nH, scale=scale)   # (B, S, H) bf16
        ctx = ctx.reshape(B * S, H)                        # free reshape, no transpose
        # o-proj + bias + residual + LayerNorm fused
        x = dense_residual_ln(ctx, lyr["o_w"], lyr["o_b"], x,
                              lyr["attn_ln_g"], lyr["attn_ln_b"])
        # FFN up + GELU + down + residual + LayerNorm fused
        x = ffn_fused(x, lyr["i_w"], lyr["i_b"], lyr["f_w"], lyr["f_b"],
                      lyr["out_ln_g"], lyr["out_ln_b"])

    # ---- classification head: <s> token -> dense+tanh -> out_proj ----
    # (tiny / lane-sparse; left as-is per review — not worth tuning)
    cls = x.reshape(B, S, H)[:, 0, :]
    h = dense_act(cls, params["cls_dense_w"], params["cls_dense_b"],
                  activation="tanh")
    logits = dense_act(h, params["cls_out_w"], params["cls_out_b"])

    if labels is not None:
        combined_loss = weighted_bce_loss(logits, labels.astype(jnp.float32))[0, 0]
        return combined_loss, logits
    return logits


# --------------------------------------------------------------------------
# Demo
# --------------------------------------------------------------------------

if __name__ == "__main__":
    # small RoBERTa config
    B, S = 2, 8
    H, nH, I, L = 64, 4, 256, 2
    VOCAB, MAX_POS = 64, 16
    NUM_LABELS = 22

    key = jax.random.PRNGKey(0)
    kp, kid, kmask, klab = jax.random.split(key, 4)

    params = init_params(kp, VOCAB, MAX_POS, H, nH, I, L, NUM_LABELS)

    input_ids = jax.random.randint(kid, (B, S), 2, VOCAB, dtype=jnp.int32)
    attention_mask = jnp.ones((B, S), jnp.int32).at[1, S - 2:].set(0)
    labels = (jax.random.uniform(klab, (B, NUM_LABELS)) < 0.2).astype(jnp.float32)

    fwd = jax.jit(functools.partial(roberta_forward, H=H, nH=nH))
    loss, logits = fwd(params, input_ids, attention_mask, labels)
    loss = jax.block_until_ready(loss)
    logits = jax.block_until_ready(logits)

    assert logits.shape == (B, NUM_LABELS)
    assert jnp.isfinite(loss) and bool(jnp.all(jnp.isfinite(logits)))
    print("KERNEL_OK")
</pallas_src>

<mosaic_0001>
module attributes {stable_mosaic.version = 11 : i64} {
  func.func @_dense_res_ln_kernel(%arg0: i32, %arg1: i32, %arg2: memref<16x64xbf16, #tpu.memory_space<vmem>>, %arg3: memref<64x64xbf16, #tpu.memory_space<vmem>>, %arg4: memref<1x64xf32, #tpu.memory_space<vmem>>, %arg5: memref<16x64xf32, #tpu.memory_space<vmem>>, %arg6: memref<1x64xf32, #tpu.memory_space<vmem>>, %arg7: memref<1x64xf32, #tpu.memory_space<vmem>>, %arg8: memref<16x64xf32, #tpu.memory_space<vmem>>, %arg9: memref<16x64xf32, #tpu.memory_space<vmem>>) attributes {dimension_semantics = [#tpu.dimension_semantics<parallel>, #tpu.dimension_semantics<arbitrary>], iteration_bounds = array<i64: 1, 1>, scalar_prefetch = 0 : i64, scratch_operands = 1 : i64, tpu.core_type = #tpu.core_type<tc>, window_params = [{transform_indices = @transform_0, window_bounds = array<i64: 16, 64>}, {transform_indices = @transform_1, window_bounds = array<i64: 64, 64>}, {pipeline_mode = #tpu.pipeline_mode<synchronous>, transform_indices = @transform_2, window_bounds = array<i64: 1, 64>}, {transform_indices = @transform_3, window_bounds = array<i64: 16, 64>}, {pipeline_mode = #tpu.pipeline_mode<synchronous>, transform_indices = @transform_4, window_bounds = array<i64: 1, 64>}, {pipeline_mode = #tpu.pipeline_mode<synchronous>, transform_indices = @transform_5, window_bounds = array<i64: 1, 64>}, {transform_indices = @transform_6, window_bounds = array<i64: 16, 64>}]} {
    %c0_i32 = arith.constant 0 : i32
    %0 = arith.cmpi eq, %arg1, %c0_i32 : i32
    %1 = arith.extui %0 : i1 to i32
    %c0_i32_0 = arith.constant 0 : i32
    %2 = arith.cmpi ne, %1, %c0_i32_0 : i32
    scf.if %2 {
      %cst_10 = arith.constant 0.000000e+00 : f32
      %12 = vector.broadcast %cst_10 : f32 to vector<16x64xf32>
      %c0_11 = arith.constant 0 : index
      %c0_12 = arith.constant 0 : index
      %13 = vector.load %arg9[%c0_11, %c0_12] : memref<16x64xf32, #tpu.memory_space<vmem>>, vector<16x64xf32>
      tpu.vector_store %arg9[%c0_11, %c0_12], %12 {strides = array<i32>} : memref<16x64xf32, #tpu.memory_space<vmem>>, vector<16x64xf32>,
    } else {
    }
    %c0 = arith.constant 0 : index
    %c0_1 = arith.constant 0 : index
    %3 = vector.load %arg9[%c0, %c0_1] : memref<16x64xf32, #tpu.memory_space<vmem>>, vector<16x64xf32>
    %c0_2 = arith.constant 0 : index
    %c0_3 = arith.constant 0 : index
    %4 = vector.load %arg2[%c0_2, %c0_3] : memref<16x64xbf16, #tpu.memory_space<vmem>>, vector<16x64xbf16>
    %c0_4 = arith.constant 0 : index
    %c0_5 = arith.constant 0 : index
    %5 = vector.load %arg3[%c0_4, %c0_5] : memref<64x64xbf16, #tpu.memory_space<vmem>>, vector<64x64xbf16>
    %cst = arith.constant dense<0.000000e+00> : vector<16x64xf32>
    %6 = tpu.matmul %4, %5, %cst {dimension_numbers = #tpu.dot_dimension_numbers<[1], [0], [0], [1], [0, 0, 1, 1], [], []>} : vector<16x64xbf16>, vector<64x64xbf16>, vector<16x64xf32> -> vector<16x64xf32>
    %7 = arith.addf %3, %6 : vector<16x64xf32>
    %c0_6 = arith.constant 0 : index
    %c0_7 = arith.constant 0 : index
    %8 = vector.load %arg9[%c0_6, %c0_7] : memref<16x64xf32, #tpu.memory_space<vmem>>, vector<16x64xf32>
    tpu.vector_store %arg9[%c0_6, %c0_7], %7 {strides = array<i32>} : memref<16x64xf32, #tpu.memory_space<vmem>>, vector<16x64xf32>,
    %c0_i32_8 = arith.constant 0 : i32
    %9 = arith.cmpi eq, %arg1, %c0_i32_8 : i32
    %10 = arith.extui %9 : i1 to i32
    %c0_i32_9 = arith.constant 0 : i32
    %11 = arith.cmpi ne, %10, %c0_i32_9 : i32
    scf.if %11 {
      %c0_10 = arith.constant 0 : index
      %c0_11 = arith.constant 0 : index
      %12 = vector.load %arg9[%c0_10, %c0_11] : memref<16x64xf32, #tpu.memory_space<vmem>>, vector<16x64xf32>
      %c0_12 = arith.constant 0 : index
      %c0_13 = arith.constant 0 : index
      %13 = vector.load %arg4[%c0_12, %c0_13] : memref<1x64xf32, #tpu.memory_space<vmem>>, vector<1x64xf32>
      %14 = vector.broadcast %13 : vector<1x64xf32> to vector<16x64xf32>
      %15 = arith.addf %12, %14 : vector<16x64xf32>
      %c0_14 = arith.constant 0 : index
      %c0_15 = arith.constant 0 : index
      %16 = vector.load %arg5[%c0_14, %c0_15] : memref<16x64xf32, #tpu.memory_space<vmem>>, vector<16x64xf32>
      %17 = arith.addf %15, %16 : vector<16x64xf32>
      %cst_16 = arith.constant dense<0.000000e+00> : vector<16xf32>
      %18 = vector.multi_reduction <add>, %17, %cst_16 [1] : vector<16x64xf32> to vector<16xf32>
      %19 = vector.shape_cast %18 : vector<16xf32> to vector<16x1xf32>
      %cst_17 = arith.constant 6.400000e+01 : f32
      %20 = vector.broadcast %cst_17 : f32 to vector<16x1xf32>
      %21 = arith.divf %19, %20 : vector<16x1xf32>
      %22 = vector.broadcast %21 : vector<16x1xf32> to vector<16x64xf32>
      %23 = arith.subf %17, %22 : vector<16x64xf32>
      %24 = arith.mulf %23, %23 : vector<16x64xf32>
      %cst_18 = arith.constant dense<0.000000e+00> : vector<16xf32>
      %25 = vector.multi_reduction <add>, %24, %cst_18 [1] : vector<16x64xf32> to vector<16xf32>
      %26 = vector.shape_cast %25 : vector<16xf32> to vector<16x1xf32>
      %cst_19 = arith.constant 6.400000e+01 : f32
      %27 = vector.broadcast %cst_19 : f32 to vector<16x1xf32>
      %28 = arith.divf %26, %27 : vector<16x1xf32>
      %cst_20 = arith.constant 9.99999974E-6 : f32
      %29 = vector.broadcast %cst_20 : f32 to vector<16x1xf32>
      %30 = arith.addf %28, %29 : vector<16x1xf32>
      %31 = math.rsqrt %30 : vector<16x1xf32>
      %32 = vector.broadcast %31 : vector<16x1xf32> to vector<16x64xf32>
      %33 = arith.mulf %23, %32 : vector<16x64xf32>
      %c0_21 = arith.constant 0 : index
      %c0_22 = arith.constant 0 : index
      %34 = vector.load %arg6[%c0_21, %c0_22] : memref<1x64xf32, #tpu.memory_space<vmem>>, vector<1x64xf32>
      %35 = vector.broadcast %34 : vector<1x64xf32> to vector<16x64xf32>
      %36 = arith.mulf %33, %35 : vector<16x64xf32>
      %c0_23 = arith.constant 0 : index
      %c0_24 = arith.constant 0 : index
      %37 = vector.load %arg7[%c0_23, %c0_24] : memref<1x64xf32, #tpu.memory_space<vmem>>, vector<1x64xf32>
      %38 = vector.broadcast %37 : vector<1x64xf32> to vector<16x64xf32>
      %39 = arith.addf %36, %38 : vector<16x64xf32>
      %c0_25 = arith.constant 0 : index
      %c0_26 = arith.constant 0 : index
      %40 = vector.load %arg8[%c0_25, %c0_26] : memref<16x64xf32, #tpu.memory_space<vmem>>, vector<16x64xf32>
      tpu.vector_store %arg8[%c0_25, %c0_26], %39 {strides = array<i32>} : memref<16x64xf32, #tpu.memory_space<vmem>>, vector<16x64xf32>,
    } else {
    }
    return
  }
  func.func @transform_0(%arg0: i32, %arg1: i32) -> (i32, i32) {
    %c0_i32 = arith.constant 0 : i32
    return %arg0, %arg1 : i32, i32
  }
  func.func @transform_1(%arg0: i32, %arg1: i32) -> (i32, i32) {
    %c0_i32 = arith.constant 0 : i32
    %c0_i32_0 = arith.constant 0 : i32
    return %arg1, %c0_i32 : i32, i32
  }
  func.func @transform_2(%arg0: i32, %arg1: i32) -> (i32, i32) {
    %c0_i32 = arith.constant 0 : i32
    %c0_i32_0 = arith.constant 0 : i32
    %c0_i32_1 = arith.constant 0 : i32
    return %c0_i32, %c0_i32_0 : i32, i32
  }
  func.func @transform_3(%arg0: i32, %arg1: i32) -> (i32, i32) {
    %c0_i32 = arith.constant 0 : i32
    %c0_i32_0 = arith.constant 0 : i32
    return %arg0, %c0_i32 : i32, i32
  }
  func.func @transform_4(%arg0: i32, %arg1: i32) -> (i32, i32) {
    %c0_i32 = arith.constant 0 : i32
    %c0_i32_0 = arith.constant 0 : i32
    %c0_i32_1 = arith.constant 0 : i32
    return %c0_i32, %c0_i32_0 : i32, i32
  }
  func.func @transform_5(%arg0: i32, %arg1: i32) -> (i32, i32) {
    %c0_i32 = arith.constant 0 : i32
    %c0_i32_0 = arith.constant 0 : i32
    %c0_i32_1 = arith.constant 0 : i32
    return %c0_i32, %c0_i32_0 : i32, i32
  }
  func.func @transform_6(%arg0: i32, %arg1: i32) -> (i32, i32) {
    %c0_i32 = arith.constant 0 : i32
    %c0_i32_0 = arith.constant 0 : i32
    return %arg0, %c0_i32 : i32, i32
  }
}

module attributes {stable_mosaic.version = 11 : i64} {
  func.func @_dense_act_kernel(%arg0: i32, %arg1: i32, %arg2: i32, %arg3: memref<16x64xf32, #tpu.memory_space<vmem>>, %arg4: memref<64x192xbf16, #tpu.memory_space<vmem>>, %arg5: memref<1x192xf32, #tpu.memory_space<vmem>>, %arg6: memref<16x192xbf16, #tpu.memory_space<vmem>>, %arg7: memref<16x192xf32, #tpu.memory_space<vmem>>) attributes {dimension_semantics = [#tpu.dimension_semantics<parallel>, #tpu.dimension_semantics<parallel>, #tpu.dimension_semantics<arbitrary>], iteration_bounds = array<i64: 1, 1, 1>, scalar_prefetch = 0 : i64, scratch_operands = 1 : i64, tpu.core_type = #tpu.core_type<tc>, window_params = [{transform_indices = @transform_0, window_bounds = array<i64: 16, 64>}, {transform_indices = @transform_1, window_bounds = array<i64: 64, 192>}, {transform_indices = @transform_2, window_bounds = array<i64: 1, 192>}, {transform_indices = @transform_3, window_bounds = array<i64: 16, 192>}]} {
    %c0_i32 = arith.constant 0 : i32
    %0 = arith.cmpi eq, %arg2, %c0_i32 : i32
    %1 = arith.extui %0 : i1 to i32
    %c0_i32_0 = arith.constant 0 : i32
    %2 = arith.cmpi ne, %1, %c0_i32_0 : i32
    scf.if %2 {
      %cst_10 = arith.constant 0.000000e+00 : f32
      %13 = vector.broadcast %cst_10 : f32 to vector<16x192xf32>
      %c0_11 = arith.constant 0 : index
      %c0_12 = arith.constant 0 : index
      %14 = vector.load %arg7[%c0_11, %c0_12] : memref<16x192xf32, #tpu.memory_space<vmem>>, vector<16x192xf32>
      tpu.vector_store %arg7[%c0_11, %c0_12], %13 {strides = array<i32>} : memref<16x192xf32, #tpu.memory_space<vmem>>, vector<16x192xf32>,
    } else {
    }
    %c0 = arith.constant 0 : index
    %c0_1 = arith.constant 0 : index
    %3 = vector.load %arg7[%c0, %c0_1] : memref<16x192xf32, #tpu.memory_space<vmem>>, vector<16x192xf32>
    %c0_2 = arith.constant 0 : index
    %c0_3 = arith.constant 0 : index
    %4 = vector.load %arg3[%c0_2, %c0_3] : memref<16x64xf32, #tpu.memory_space<vmem>>, vector<16x64xf32>
    %5 = arith.truncf %4 : vector<16x64xf32> to vector<16x64xbf16>
    %c0_4 = arith.constant 0 : index
    %c0_5 = arith.constant 0 : index
    %6 = vector.load %arg4[%c0_4, %c0_5] : memref<64x192xbf16, #tpu.memory_space<vmem>>, vector<64x192xbf16>
    %cst = arith.constant dense<0.000000e+00> : vector<16x192xf32>
    %7 = tpu.matmul %5, %6, %cst {dimension_numbers = #tpu.dot_dimension_numbers<[1], [0], [0], [1], [0, 0, 1, 1], [], []>} : vector<16x64xbf16>, vector<64x192xbf16>, vector<16x192xf32> -> vector<16x192xf32>
    %8 = arith.addf %3, %7 : vector<16x192xf32>
    %c0_6 = arith.constant 0 : index
    %c0_7 = arith.constant 0 : index
    %9 = vector.load %arg7[%c0_6, %c0_7] : memref<16x192xf32, #tpu.memory_space<vmem>>, vector<16x192xf32>
    tpu.vector_store %arg7[%c0_6, %c0_7], %8 {strides = array<i32>} : memref<16x192xf32, #tpu.memory_space<vmem>>, vector<16x192xf32>,
    %c0_i32_8 = arith.constant 0 : i32
    %10 = arith.cmpi eq, %arg2, %c0_i32_8 : i32
    %11 = arith.extui %10 : i1 to i32
    %c0_i32_9 = arith.constant 0 : i32
    %12 = arith.cmpi ne, %11, %c0_i32_9 : i32
    scf.if %12 {
      %c0_10 = arith.constant 0 : index
      %c0_11 = arith.constant 0 : index
      %13 = vector.load %arg7[%c0_10, %c0_11] : memref<16x192xf32, #tpu.memory_space<vmem>>, vector<16x192xf32>
      %c0_12 = arith.constant 0 : index
      %c0_13 = arith.constant 0 : index
      %14 = vector.load %arg5[%c0_12, %c0_13] : memref<1x192xf32, #tpu.memory_space<vmem>>, vector<1x192xf32>
      %15 = vector.broadcast %14 : vector<1x192xf32> to vector<16x192xf32>
      %16 = arith.addf %13, %15 : vector<16x192xf32>
      %17 = arith.truncf %16 : vector<16x192xf32> to vector<16x192xbf16>
      %c0_14 = arith.constant 0 : index
      %c0_15 = arith.constant 0 : index
      %18 = vector.load %arg6[%c0_14, %c0_15] : memref<16x192xbf16, #tpu.memory_space<vmem>>, vector<16x192xbf16>
      tpu.vector_store %arg6[%c0_14, %c0_15], %17 {strides = array<i32>} : memref<16x192xbf16, #tpu.memory_space<vmem>>, vector<16x192xbf16>,
    } else {
    }
    return
  }
  func.func @transform_0(%arg0: i32, %arg1: i32, %arg2: i32) -> (i32, i32) {
    %c0_i32 = arith.constant 0 : i32
    return %arg0, %arg2 : i32, i32
  }
  func.func @transform_1(%arg0: i32, %arg1: i32, %arg2: i32) -> (i32, i32) {
    %c0_i32 = arith.constant 0 : i32
    return %arg2, %arg1 : i32, i32
  }
  func.func @transform_2(%arg0: i32, %arg1: i32, %arg2: i32) -> (i32, i32) {
    %c0_i32 = arith.constant 0 : i32
    %c0_i32_0 = arith.constant 0 : i32
    return %c0_i32, %arg1 : i32, i32
  }
  func.func @transform_3(%arg0: i32, %arg1: i32, %arg2: i32) -> (i32, i32) {
    %c0_i32 = arith.constant 0 : i32
    return %arg0, %arg1 : i32, i32
  }
}

module attributes {stable_mosaic.version = 11 : i64} {
  func.func @_ln_kernel(%arg0: i32, %arg1: memref<16x64xf32, #tpu.memory_space<vmem>>, %arg2: memref<1x64xf32, #tpu.memory_space<vmem>>, %arg3: memref<1x64xf32, #tpu.memory_space<vmem>>, %arg4: memref<16x64xf32, #tpu.memory_space<vmem>>) attributes {dimension_semantics = [#tpu.dimension_semantics<parallel>], iteration_bounds = array<i64: 1>, scalar_prefetch = 0 : i64, scratch_operands = 0 : i64, tpu.core_type = #tpu.core_type<tc>, window_params = [{transform_indices = @transform_0, window_bounds = array<i64: 16, 64>}, {pipeline_mode = #tpu.pipeline_mode<synchronous>, transform_indices = @transform_1, window_bounds = array<i64: 1, 64>}, {pipeline_mode = #tpu.pipeline_mode<synchronous>, transform_indices = @transform_2, window_bounds = array<i64: 1, 64>}, {transform_indices = @transform_3, window_bounds = array<i64: 16, 64>}]} {
    %c0 = arith.constant 0 : index
    %c0_0 = arith.constant 0 : index
    %0 = vector.load %arg1[%c0, %c0_0] : memref<16x64xf32, #tpu.memory_space<vmem>>, vector<16x64xf32>
    %cst = arith.constant dense<0.000000e+00> : vector<16xf32>
    %1 = vector.multi_reduction <add>, %0, %cst [1] : vector<16x64xf32> to vector<16xf32>
    %2 = vector.shape_cast %1 : vector<16xf32> to vector<16x1xf32>
    %cst_1 = arith.constant 6.400000e+01 : f32
    %3 = vector.broadcast %cst_1 : f32 to vector<16x1xf32>
    %4 = arith.divf %2, %3 : vector<16x1xf32>
    %5 = vector.broadcast %4 : vector<16x1xf32> to vector<16x64xf32>
    %6 = arith.subf %0, %5 : vector<16x64xf32>
    %7 = arith.mulf %6, %6 : vector<16x64xf32>
    %cst_2 = arith.constant dense<0.000000e+00> : vector<16xf32>
    %8 = vector.multi_reduction <add>, %7, %cst_2 [1] : vector<16x64xf32> to vector<16xf32>
    %9 = vector.shape_cast %8 : vector<16xf32> to vector<16x1xf32>
    %cst_3 = arith.constant 6.400000e+01 : f32
    %10 = vector.broadcast %cst_3 : f32 to vector<16x1xf32>
    %11 = arith.divf %9, %10 : vector<16x1xf32>
    %cst_4 = arith.constant 9.99999974E-6 : f32
    %12 = vector.broadcast %cst_4 : f32 to vector<16x1xf32>
    %13 = arith.addf %11, %12 : vector<16x1xf32>
    %14 = math.rsqrt %13 : vector<16x1xf32>
    %15 = vector.broadcast %14 : vector<16x1xf32> to vector<16x64xf32>
    %16 = arith.mulf %6, %15 : vector<16x64xf32>
    %c0_5 = arith.constant 0 : index
    %c0_6 = arith.constant 0 : index
    %17 = vector.load %arg2[%c0_5, %c0_6] : memref<1x64xf32, #tpu.memory_space<vmem>>, vector<1x64xf32>
    %18 = vector.broadcast %17 : vector<1x64xf32> to vector<16x64xf32>
    %19 = arith.mulf %16, %18 : vector<16x64xf32>
    %c0_7 = arith.constant 0 : index
    %c0_8 = arith.constant 0 : index
    %20 = vector.load %arg3[%c0_7, %c0_8] : memref<1x64xf32, #tpu.memory_space<vmem>>, vector<1x64xf32>
    %21 = vector.broadcast %20 : vector<1x64xf32> to vector<16x64xf32>
    %22 = arith.addf %19, %21 : vector<16x64xf32>
    %c0_9 = arith.constant 0 : index
    %c0_10 = arith.constant 0 : index
    %23 = vector.load %arg4[%c0_9, %c0_10] : memref<16x64xf32, #tpu.memory_space<vmem>>, vector<16x64xf32>
    tpu.vector_store %arg4[%c0_9, %c0_10], %22 {strides = array<i32>} : memref<16x64xf32, #tpu.memory_space<vmem>>, vector<16x64xf32>,
    return
  }
  func.func @transform_0(%arg0: i32) -> (i32, i32) {
    %c0_i32 = arith.constant 0 : i32
    %c0_i32_0 = arith.constant 0 : i32
    return %arg0, %c0_i32 : i32, i32
  }
  func.func @transform_1(%arg0: i32) -> (i32, i32) {
    %c0_i32 = arith.constant 0 : i32
    %c0_i32_0 = arith.constant 0 : i32
    %c0_i32_1 = arith.constant 0 : i32
    return %c0_i32, %c0_i32_0 : i32, i32
  }
  func.func @transform_2(%arg0: i32) -> (i32, i32) {
    %c0_i32 = arith.constant 0 : i32
    %c0_i32_0 = arith.constant 0 : i32
    %c0_i32_1 = arith.constant 0 : i32
    return %c0_i32, %c0_i32_0 : i32, i32
  }
  func.func @transform_3(%arg0: i32) -> (i32, i32) {
    %c0_i32 = arith.constant 0 : i32
    %c0_i32_0 = arith.constant 0 : i32
    return %arg0, %c0_i32 : i32, i32
  }
}

module attributes {stable_mosaic.version = 11 : i64} {
  func.func @_attention_kernel(%arg0: i32, %arg1: memref<1x8x192xbf16, #tpu.memory_space<vmem>>, %arg2: memref<1x1x8xf32, #tpu.memory_space<vmem>>, %arg3: memref<1x8x64xbf16, #tpu.memory_space<vmem>>) attributes {dimension_semantics = [#tpu.dimension_semantics<parallel>], iteration_bounds = array<i64: 2>, scalar_prefetch = 0 : i64, scratch_operands = 0 : i64, tpu.core_type = #tpu.core_type<tc>, window_params = [{transform_indices = @transform_0, window_bounds = array<i64: 1, 8, 192>}, {transform_indices = @transform_1, window_bounds = array<i64: 1, 1, 8>}, {transform_indices = @transform_2, window_bounds = array<i64: 1, 8, 64>}]} {
    %c0 = arith.constant 0 : index
    %c0_0 = arith.constant 0 : index
    %c0_1 = arith.constant 0 : index
    %0 = vector.load %arg2[%c0, %c0_0, %c0_1] : memref<1x1x8xf32, #tpu.memory_space<vmem>>, vector<1x1x8xf32>
    %1 = vector.shape_cast %0 : vector<1x1x8xf32> to vector<1x8xf32>
    %cst = arith.constant 1.000000e+00 : f32
    %2 = vector.broadcast %cst : f32 to vector<1x8xf32>
    %3 = arith.subf %2, %1 : vector<1x8xf32>
    %cst_2 = arith.constant -1.000000e+09 : f32
    %4 = vector.broadcast %cst_2 : f32 to vector<1x8xf32>
    %5 = arith.mulf %3, %4 : vector<1x8xf32>
    %c0_3 = arith.constant 0 : index
    %c0_4 = arith.constant 0 : index
    %c0_5 = arith.constant 0 : index
    %6 = vector.load %arg1[%c0_3, %c0_4, %c0_5] : memref<1x8x192xbf16, #tpu.memory_space<vmem>>, vector<1x8x16xbf16>
    %7 = vector.shape_cast %6 : vector<1x8x16xbf16> to vector<8x16xbf16>
    %c0_6 = arith.constant 0 : index
    %c0_7 = arith.constant 0 : index
    %c64 = arith.constant 64 : index
    %8 = vector.load %arg1[%c0_6, %c0_7, %c64] : memref<1x8x192xbf16, #tpu.memory_space<vmem>>, vector<1x8x16xbf16>
    %9 = vector.shape_cast %8 : vector<1x8x16xbf16> to vector<8x16xbf16>
    %c0_8 = arith.constant 0 : index
    %c0_9 = arith.constant 0 : index
    %c128 = arith.constant 128 : index
    %10 = vector.load %arg1[%c0_8, %c0_9, %c128] : memref<1x8x192xbf16, #tpu.memory_space<vmem>>, vector<1x8x16xbf16>
    %11 = vector.shape_cast %10 : vector<1x8x16xbf16> to vector<8x16xbf16>
    %cst_10 = arith.constant dense<0.000000e+00> : vector<8x8xf32>
    %12 = tpu.matmul %7, %9, %cst_10 {dimension_numbers = #tpu.dot_dimension_numbers<[1], [1], [0], [0], [0, 0, 1, 0], [], []>} : vector<8x16xbf16>, vector<8x16xbf16>, vector<8x8xf32> -> vector<8x8xf32>
    %cst_11 = arith.constant 2.500000e-01 : f32
    %13 = vector.broadcast %cst_11 : f32 to vector<8x8xf32>
    %14 = arith.mulf %12, %13 : vector<8x8xf32>
    %15 = vector.broadcast %5 : vector<1x8xf32> to vector<8x8xf32>
    %16 = arith.addf %14, %15 : vector<8x8xf32>
    %cst_12 = arith.constant dense<0xFF800000> : vector<8xf32>
    %17 = vector.multi_reduction <maximumf>, %16, %cst_12 [1] : vector<8x8xf32> to vector<8xf32>
    %18 = vector.shape_cast %17 : vector<8xf32> to vector<8x1xf32>
    %19 = vector.broadcast %18 : vector<8x1xf32> to vector<8x8xf32>
    %20 = arith.subf %16, %19 : vector<8x8xf32>
    %21 = math.exp %20 : vector<8x8xf32>
    %cst_13 = arith.constant dense<0.000000e+00> : vector<8xf32>
    %22 = vector.multi_reduction <add>, %21, %cst_13 [1] : vector<8x8xf32> to vector<8xf32>
    %23 = vector.shape_cast %22 : vector<8xf32> to vector<8x1xf32>
    %24 = tpu.reciprocal %23 {approx = true} : vector<8x1xf32> -> vector<8x1xf32>
    %25 = vector.broadcast %24 : vector<8x1xf32> to vector<8x8xf32>
    %26 = arith.mulf %21, %25 : vector<8x8xf32>
    %27 = arith.truncf %26 : vector<8x8xf32> to vector<8x8xbf16>
    %cst_14 = arith.constant dense<0.000000e+00> : vector<8x16xf32>
    %28 = tpu.matmul %27, %11, %cst_14 {dimension_numbers = #tpu.dot_dimension_numbers<[1], [0], [0], [1], [0, 0, 1, 1], [], []>} : vector<8x8xbf16>, vector<8x16xbf16>, vector<8x16xf32> -> vector<8x16xf32>
    %29 = arith.truncf %28 : vector<8x16xf32> to vector<8x16xbf16>
    %c0_15 = arith.constant 0 : index
    %c0_16 = arith.constant 0 : index
    %c0_17 = arith.constant 0 : index
    %30 = vector.load %arg3[%c0_15, %c0_16, %c0_17] : memref<1x8x64xbf16, #tpu.memory_space<vmem>>, vector<1x8x16xbf16>
    %31 = vector.shape_cast %30 : vector<1x8x16xbf16> to vector<8x16xbf16>
    %32 = vector.shape_cast %29 : vector<8x16xbf16> to vector<1x8x16xbf16>
    tpu.vector_store %arg3[%c0_15, %c0_16, %c0_17], %32 {strides = array<i32>} : memref<1x8x64xbf16, #tpu.memory_space<vmem>>, vector<1x8x16xbf16>,
    %c0_18 = arith.constant 0 : index
    %c0_19 = arith.constant 0 : index
    %c16 = arith.constant 16 : index
    %33 = vector.load %arg1[%c0_18, %c0_19, %c16] : memref<1x8x192xbf16, #tpu.memory_space<vmem>>, vector<1x8x16xbf16>
    %34 = vector.shape_cast %33 : vector<1x8x16xbf16> to vector<8x16xbf16>
    %c0_20 = arith.constant 0 : index
    %c0_21 = arith.constant 0 : index
    %c80 = arith.constant 80 : index
    %35 = vector.load %arg1[%c0_20, %c0_21, %c80] : memref<1x8x192xbf16, #tpu.memory_space<vmem>>, vector<1x8x16xbf16>
    %36 = vector.shape_cast %35 : vector<1x8x16xbf16> to vector<8x16xbf16>
    %c0_22 = arith.constant 0 : index
    %c0_23 = arith.constant 0 : index
    %c144 = arith.constant 144 : index
    %37 = vector.load %arg1[%c0_22, %c0_23, %c144] : memref<1x8x192xbf16, #tpu.memory_space<vmem>>, vector<1x8x16xbf16>
    %38 = vector.shape_cast %37 : vector<1x8x16xbf16> to vector<8x16xbf16>
    %cst_24 = arith.constant dense<0.000000e+00> : vector<8x8xf32>
    %39 = tpu.matmul %34, %36, %cst_24 {dimension_numbers = #tpu.dot_dimension_numbers<[1], [1], [0], [0], [0, 0, 1, 0], [], []>} : vector<8x16xbf16>, vector<8x16xbf16>, vector<8x8xf32> -> vector<8x8xf32>
    %cst_25 = arith.constant 2.500000e-01 : f32
    %40 = vector.broadcast %cst_25 : f32 to vector<8x8xf32>
    %41 = arith.mulf %39, %40 : vector<8x8xf32>
    %42 = vector.broadcast %5 : vector<1x8xf32> to vector<8x8xf32>
    %43 = arith.addf %41, %42 : vector<8x8xf32>
    %cst_26 = arith.constant dense<0xFF800000> : vector<8xf32>
    %44 = vector.multi_reduction <maximumf>, %43, %cst_26 [1] : vector<8x8xf32> to vector<8xf32>
    %45 = vector.shape_cast %44 : vector<8xf32> to vector<8x1xf32>
    %46 = vector.broadcast %45 : vector<8x1xf32> to vector<8x8xf32>
    %47 = arith.subf %43, %46 : vector<8x8xf32>
    %48 = math.exp %47 : vector<8x8xf32>
    %cst_27 = arith.constant dense<0.000000e+00> : vector<8xf32>
    %49 = vector.multi_reduction <add>, %48, %cst_27 [1] : vector<8x8xf32> to vector<8xf32>
    %50 = vector.shape_cast %49 : vector<8xf32> to vector<8x1xf32>
    %51 = tpu.reciprocal %50 {approx = true} : vector<8x1xf32> -> vector<8x1xf32>
    %52 = vector.broadcast %51 : vector<8x1xf32> to vector<8x8xf32>
    %53 = arith.mulf %48, %52 : vector<8x8xf32>
    %54 = arith.truncf %53 : vector<8x8xf32> to vector<8x8xbf16>
    %cst_28 = arith.constant dense<0.000000e+00> : vector<8x16xf32>
    %55 = tpu.matmul %54, %38, %cst_28 {dimension_numbers = #tpu.dot_dimension_numbers<[1], [0], [0], [1], [0, 0, 1, 1], [], []>} : vector<8x8xbf16>, vector<8x16xbf16>, vector<8x16xf32> -> vector<8x16xf32>
    %56 = arith.truncf %55 : vector<8x16xf32> to vector<8x16xbf16>
    %c0_29 = arith.constant 0 : index
    %c0_30 = arith.constant 0 : index
    %c16_31 = arith.constant 16 : index
    %57 = vector.load %arg3[%c0_29, %c0_30, %c16_31] : memref<1x8x64xbf16, #tpu.memory_space<vmem>>, vector<1x8x16xbf16>
    %58 = vector.shape_cast %57 : vector<1x8x16xbf16> to vector<8x16xbf16>
    %59 = vector.shape_cast %56 : vector<8x16xbf16> to vector<1x8x16xbf16>
    tpu.vector_store %arg3[%c0_29, %c0_30, %c16_31], %59 {strides = array<i32>} : memref<1x8x64xbf16, #tpu.memory_space<vmem>>, vector<1x8x16xbf16>,
    %c0_32 = arith.constant 0 : index
    %c0_33 = arith.constant 0 : index
    %c32 = arith.constant 32 : index
    %60 = vector.load %arg1[%c0_32, %c0_33, %c32] : memref<1x8x192xbf16, #tpu.memory_space<vmem>>, vector<1x8x16xbf16>
    %61 = vector.shape_cast %60 : vector<1x8x16xbf16> to vector<8x16xbf16>
    %c0_34 = arith.constant 0 : index
    %c0_35 = arith.constant 0 : index
    %c96 = arith.constant 96 : index
    %62 = vector.load %arg1[%c0_34, %c0_35, %c96] : memref<1x8x192xbf16, #tpu.memory_space<vmem>>, vector<1x8x16xbf16>
    %63 = vector.shape_cast %62 : vector<1x8x16xbf16> to vector<8x16xbf16>
    %c0_36 = arith.constant 0 : index
    %c0_37 = arith.constant 0 : index
    %c160 = arith.constant 160 : index
    %64 = vector.load %arg1[%c0_36, %c0_37, %c160] : memref<1x8x192xbf16, #tpu.memory_space<vmem>>, vector<1x8x16xbf16>
    %65 = vector.shape_cast %64 : vector<1x8x16xbf16> to vector<8x16xbf16>
    %cst_38 = arith.constant dense<0.000000e+00> : vector<8x8xf32>
    %66 = tpu.matmul %61, %63, %cst_38 {dimension_numbers = #tpu.dot_dimension_numbers<[1], [1], [0], [0], [0, 0, 1, 0], [], []>} : vector<8x16xbf16>, vector<8x16xbf16>, vector<8x8xf32> -> vector<8x8xf32>
    %cst_39 = arith.constant 2.500000e-01 : f32
    %67 = vector.broadcast %cst_39 : f32 to vector<8x8xf32>
    %68 = arith.mulf %66, %67 : vector<8x8xf32>
    %69 = vector.broadcast %5 : vector<1x8xf32> to vector<8x8xf32>
    %70 = arith.addf %68, %69 : vector<8x8xf32>
    %cst_40 = arith.constant dense<0xFF800000> : vector<8xf32>
    %71 = vector.multi_reduction <maximumf>, %70, %cst_40 [1] : vector<8x8xf32> to vector<8xf32>
    %72 = vector.shape_cast %71 : vector<8xf32> to vector<8x1xf32>
    %73 = vector.broadcast %72 : vector<8x1xf32> to vector<8x8xf32>
    %74 = arith.subf %70, %73 : vector<8x8xf32>
    %75 = math.exp %74 : vector<8x8xf32>
    %cst_41 = arith.constant dense<0.000000e+00> : vector<8xf32>
    %76 = vector.multi_reduction <add>, %75, %cst_41 [1] : vector<8x8xf32> to vector<8xf32>
    %77 = vector.shape_cast %76 : vector<8xf32> to vector<8x1xf32>
    %78 = tpu.reciprocal %77 {approx = true} : vector<8x1xf32> -> vector<8x1xf32>
    %79 = vector.broadcast %78 : vector<8x1xf32> to vector<8x8xf32>
    %80 = arith.mulf %75, %79 : vector<8x8xf32>
    %81 = arith.truncf %80 : vector<8x8xf32> to vector<8x8xbf16>
    %cst_42 = arith.constant dense<0.000000e+00> : vector<8x16xf32>
    %82 = tpu.matmul %81, %65, %cst_42 {dimension_numbers = #tpu.dot_dimension_numbers<[1], [0], [0], [1], [0, 0, 1, 1], [], []>} : vector<8x8xbf16>, vector<8x16xbf16>, vector<8x16xf32> -> vector<8x16xf32>
    %83 = arith.truncf %82 : vector<8x16xf32> to vector<8x16xbf16>
    %c0_43 = arith.constant 0 : index
    %c0_44 = arith.constant 0 : index
    %c32_45 = arith.constant 32 : index
    %84 = vector.load %arg3[%c0_43, %c0_44, %c32_45] : memref<1x8x64xbf16, #tpu.memory_space<vmem>>, vector<1x8x16xbf16>
    %85 = vector.shape_cast %84 : vector<1x8x16xbf16> to vector<8x16xbf16>
    %86 = vector.shape_cast %83 : vector<8x16xbf16> to vector<1x8x16xbf16>
    tpu.vector_store %arg3[%c0_43, %c0_44, %c32_45], %86 {strides = array<i32>} : memref<1x8x64xbf16, #tpu.memory_space<vmem>>, vector<1x8x16xbf16>,
    %c0_46 = arith.constant 0 : index
    %c0_47 = arith.constant 0 : index
    %c48 = arith.constant 48 : index
    %87 = vector.load %arg1[%c0_46, %c0_47, %c48] : memref<1x8x192xbf16, #tpu.memory_space<vmem>>, vector<1x8x16xbf16>
    %88 = vector.shape_cast %87 : vector<1x8x16xbf16> to vector<8x16xbf16>
    %c0_48 = arith.constant 0 : index
    %c0_49 = arith.constant 0 : index
    %c112 = arith.constant 112 : index
    %89 = vector.load %arg1[%c0_48, %c0_49, %c112] : memref<1x8x192xbf16, #tpu.memory_space<vmem>>, vector<1x8x16xbf16>
    %90 = vector.shape_cast %89 : vector<1x8x16xbf16> to vector<8x16xbf16>
    %c0_50 = arith.constant 0 : index
    %c0_51 = arith.constant 0 : index
    %c176 = arith.constant 176 : index
    %91 = vector.load %arg1[%c0_50, %c0_51, %c176] : memref<1x8x192xbf16, #tpu.memory_space<vmem>>, vector<1x8x16xbf16>
    %92 = vector.shape_cast %91 : vector<1x8x16xbf16> to vector<8x16xbf16>
    %cst_52 = arith.constant dense<0.000000e+00> : vector<8x8xf32>
    %93 = tpu.matmul %88, %90, %cst_52 {dimension_numbers = #tpu.dot_dimension_numbers<[1], [1], [0], [0], [0, 0, 1, 0], [], []>} : vector<8x16xbf16>, vector<8x16xbf16>, vector<8x8xf32> -> vector<8x8xf32>
    %cst_53 = arith.constant 2.500000e-01 : f32
    %94 = vector.broadcast %cst_53 : f32 to vector<8x8xf32>
    %95 = arith.mulf %93, %94 : vector<8x8xf32>
    %96 = vector.broadcast %5 : vector<1x8xf32> to vector<8x8xf32>
    %97 = arith.addf %95, %96 : vector<8x8xf32>
    %cst_54 = arith.constant dense<0xFF800000> : vector<8xf32>
    %98 = vector.multi_reduction <maximumf>, %97, %cst_54 [1] : vector<8x8xf32> to vector<8xf32>
    %99 = vector.shape_cast %98 : vector<8xf32> to vector<8x1xf32>
    %100 = vector.broadcast %99 : vector<8x1xf32> to vector<8x8xf32>
    %101 = arith.subf %97, %100 : vector<8x8xf32>
    %102 = math.exp %101 : vector<8x8xf32>
    %cst_55 = arith.constant dense<0.000000e+00> : vector<8xf32>
    %103 = vector.multi_reduction <add>, %102, %cst_55 [1] : vector<8x8xf32> to vector<8xf32>
    %104 = vector.shape_cast %103 : vector<8xf32> to vector<8x1xf32>
    %105 = tpu.reciprocal %104 {approx = true} : vector<8x1xf32> -> vector<8x1xf32>
    %106 = vector.broadcast %105 : vector<8x1xf32> to vector<8x8xf32>
    %107 = arith.mulf %102, %106 : vector<8x8xf32>
    %108 = arith.truncf %107 : vector<8x8xf32> to vector<8x8xbf16>
    %cst_56 = arith.constant dense<0.000000e+00> : vector<8x16xf32>
    %109 = tpu.matmul %108, %92, %cst_56 {dimension_numbers = #tpu.dot_dimension_numbers<[1], [0], [0], [1], [0, 0, 1, 1], [], []>} : vector<8x8xbf16>, vector<8x16xbf16>, vector<8x16xf32> -> vector<8x16xf32>
    %110 = arith.truncf %109 : vector<8x16xf32> to vector<8x16xbf16>
    %c0_57 = arith.constant 0 : index
    %c0_58 = arith.constant 0 : index
    %c48_59 = arith.constant 48 : index
    %111 = vector.load %arg3[%c0_57, %c0_58, %c48_59] : memref<1x8x64xbf16, #tpu.memory_space<vmem>>, vector<1x8x16xbf16>
    %112 = vector.shape_cast %111 : vector<1x8x16xbf16> to vector<8x16xbf16>
    %113 = vector.shape_cast %110 : vector<8x16xbf16> to vector<1x8x16xbf16>
    tpu.vector_store %arg3[%c0_57, %c0_58, %c48_59], %113 {strides = array<i32>} : memref<1x8x64xbf16, #tpu.memory_space<vmem>>, vector<1x8x16xbf16>,
    return
  }
  func.func @transform_0(%arg0: i32) -> (i32, i32, i32) {
    %c0_i32 = arith.constant 0 : i32
    %c0_i32_0 = arith.constant 0 : i32
    %c0_i32_1 = arith.constant 0 : i32
    return %arg0, %c0_i32, %c0_i32_0 : i32, i32, i32
  }
  func.func @transform_1(%arg0: i32) -> (i32, i32, i32) {
    %c0_i32 = arith.constant 0 : i32
    %c0_i32_0 = arith.constant 0 : i32
    %c0_i32_1 = arith.constant 0 : i32
    return %arg0, %c0_i32, %c0_i32_0 : i32, i32, i32
  }
  func.func @transform_2(%arg0: i32) -> (i32, i32, i32) {
    %c0_i32 = arith.constant 0 : i32
    %c0_i32_0 = arith.constant 0 : i32
    %c0_i32_1 = arith.constant 0 : i32
    return %arg0, %c0_i32, %c0_i32_0 : i32, i32, i32
  }
}

module attributes {stable_mosaic.version = 11 : i64} {
  func.func @_ffn_kernel(%arg0: i32, %arg1: i32, %arg2: memref<16x64xf32, #tpu.memory_space<vmem>>, %arg3: memref<64x256xbf16, #tpu.memory_space<vmem>>, %arg4: memref<1x256xf32, #tpu.memory_space<vmem>>, %arg5: memref<256x64xbf16, #tpu.memory_space<vmem>>, %arg6: memref<1x64xf32, #tpu.memory_space<vmem>>, %arg7: memref<1x64xf32, #tpu.memory_space<vmem>>, %arg8: memref<1x64xf32, #tpu.memory_space<vmem>>, %arg9: memref<16x64xf32, #tpu.memory_space<vmem>>, %arg10: memref<16x64xf32, #tpu.memory_space<vmem>>, %arg11: memref<16x64xbf16, #tpu.memory_space<vmem>>) attributes {dimension_semantics = [#tpu.dimension_semantics<parallel>, #tpu.dimension_semantics<arbitrary>], iteration_bounds = array<i64: 1, 1>, scalar_prefetch = 0 : i64, scratch_operands = 2 : i64, tpu.core_type = #tpu.core_type<tc>, window_params = [{transform_indices = @transform_0, window_bounds = array<i64: 16, 64>}, {transform_indices = @transform_1, window_bounds = array<i64: 64, 256>}, {transform_indices = @transform_2, window_bounds = array<i64: 1, 256>}, {transform_indices = @transform_3, window_bounds = array<i64: 256, 64>}, {pipeline_mode = #tpu.pipeline_mode<synchronous>, transform_indices = @transform_4, window_bounds = array<i64: 1, 64>}, {pipeline_mode = #tpu.pipeline_mode<synchronous>, transform_indices = @transform_5, window_bounds = array<i64: 1, 64>}, {pipeline_mode = #tpu.pipeline_mode<synchronous>, transform_indices = @transform_6, window_bounds = array<i64: 1, 64>}, {transform_indices = @transform_7, window_bounds = array<i64: 16, 64>}]} {
    %c0_i32 = arith.constant 0 : i32
    %0 = arith.cmpi eq, %arg1, %c0_i32 : i32
    %1 = arith.extui %0 : i1 to i32
    %c0_i32_0 = arith.constant 0 : i32
    %2 = arith.cmpi ne, %1, %c0_i32_0 : i32
    scf.if %2 {
      %cst_19 = arith.constant 0.000000e+00 : f32
      %31 = vector.broadcast %cst_19 : f32 to vector<16x64xf32>
      %c0_20 = arith.constant 0 : index
      %c0_21 = arith.constant 0 : index
      %32 = vector.load %arg10[%c0_20, %c0_21] : memref<16x64xf32, #tpu.memory_space<vmem>>, vector<16x64xf32>
      tpu.vector_store %arg10[%c0_20, %c0_21], %31 {strides = array<i32>} : memref<16x64xf32, #tpu.memory_space<vmem>>, vector<16x64xf32>,
      %c0_22 = arith.constant 0 : index
      %c0_23 = arith.constant 0 : index
      %33 = vector.load %arg2[%c0_22, %c0_23] : memref<16x64xf32, #tpu.memory_space<vmem>>, vector<16x64xf32>
      %34 = arith.truncf %33 : vector<16x64xf32> to vector<16x64xbf16>
      %c0_24 = arith.constant 0 : index
      %c0_25 = arith.constant 0 : index
      %35 = vector.load %arg11[%c0_24, %c0_25] : memref<16x64xbf16, #tpu.memory_space<vmem>>, vector<16x64xbf16>
      tpu.vector_store %arg11[%c0_24, %c0_25], %34 {strides = array<i32>} : memref<16x64xbf16, #tpu.memory_space<vmem>>, vector<16x64xbf16>,
    } else {
    }
    %c0 = arith.constant 0 : index
    %c0_1 = arith.constant 0 : index
    %3 = vector.load %arg11[%c0, %c0_1] : memref<16x64xbf16, #tpu.memory_space<vmem>>, vector<16x64xbf16>
    %c0_2 = arith.constant 0 : index
    %c0_3 = arith.constant 0 : index
    %4 = vector.load %arg3[%c0_2, %c0_3] : memref<64x256xbf16, #tpu.memory_space<vmem>>, vector<64x256xbf16>
    %cst = arith.constant dense<0.000000e+00> : vector<16x256xf32>
    %5 = tpu.matmul %3, %4, %cst {dimension_numbers = #tpu.dot_dimension_numbers<[1], [0], [0], [1], [0, 0, 1, 1], [], []>} : vector<16x64xbf16>, vector<64x256xbf16>, vector<16x256xf32> -> vector<16x256xf32>
    %c0_4 = arith.constant 0 : index
    %c0_5 = arith.constant 0 : index
    %6 = vector.load %arg4[%c0_4, %c0_5] : memref<1x256xf32, #tpu.memory_space<vmem>>, vector<1x256xf32>
    %7 = vector.broadcast %6 : vector<1x256xf32> to vector<16x256xf32>
    %8 = arith.addf %5, %7 : vector<16x256xf32>
    %cst_6 = arith.constant 5.000000e-01 : f32
    %9 = vector.broadcast %cst_6 : f32 to vector<16x256xf32>
    %10 = arith.mulf %9, %8 : vector<16x256xf32>
    %cst_7 = arith.constant 4.471500e-02 : f32
    %11 = vector.broadcast %cst_7 : f32 to vector<16x256xf32>
    %12 = arith.mulf %11, %8 : vector<16x256xf32>
    %13 = arith.mulf %12, %8 : vector<16x256xf32>
    %14 = arith.mulf %13, %8 : vector<16x256xf32>
    %15 = arith.addf %8, %14 : vector<16x256xf32>
    %cst_8 = arith.constant 0.797884583 : f32
    %16 = vector.broadcast %cst_8 : f32 to vector<16x256xf32>
    %17 = arith.mulf %16, %15 : vector<16x256xf32>
    %18 = math.tanh %17 : vector<16x256xf32>
    %cst_9 = arith.constant 1.000000e+00 : f32
    %19 = vector.broadcast %cst_9 : f32 to vector<16x256xf32>
    %20 = arith.addf %19, %18 : vector<16x256xf32>
    %21 = arith.mulf %10, %20 : vector<16x256xf32>
    %c0_10 = arith.constant 0 : index
    %c0_11 = arith.constant 0 : index
    %22 = vector.load %arg10[%c0_10, %c0_11] : memref<16x64xf32, #tpu.memory_space<vmem>>, vector<16x64xf32>
    %23 = arith.truncf %21 : vector<16x256xf32> to vector<16x256xbf16>
    %c0_12 = arith.constant 0 : index
    %c0_13 = arith.constant 0 : index
    %24 = vector.load %arg5[%c0_12, %c0_13] : memref<256x64xbf16, #tpu.memory_space<vmem>>, vector<256x64xbf16>
    %cst_14 = arith.constant dense<0.000000e+00> : vector<16x64xf32>
    %25 = tpu.matmul %23, %24, %cst_14 {dimension_numbers = #tpu.dot_dimension_numbers<[1], [0], [0], [1], [0, 0, 1, 1], [], []>} : vector<16x256xbf16>, vector<256x64xbf16>, vector<16x64xf32> -> vector<16x64xf32>
    %26 = arith.addf %22, %25 : vector<16x64xf32>
    %c0_15 = arith.constant 0 : index
    %c0_16 = arith.constant 0 : index
    %27 = vector.load %arg10[%c0_15, %c0_16] : memref<16x64xf32, #tpu.memory_space<vmem>>, vector<16x64xf32>
    tpu.vector_store %arg10[%c0_15, %c0_16], %26 {strides = array<i32>} : memref<16x64xf32, #tpu.memory_space<vmem>>, vector<16x64xf32>,
    %c0_i32_17 = arith.constant 0 : i32
    %28 = arith.cmpi eq, %arg1, %c0_i32_17 : i32
    %29 = arith.extui %28 : i1 to i32
    %c0_i32_18 = arith.constant 0 : i32
    %30 = arith.cmpi ne, %29, %c0_i32_18 : i32
    scf.if %30 {
      %c0_19 = arith.constant 0 : index
      %c0_20 = arith.constant 0 : index
      %31 = vector.load %arg10[%c0_19, %c0_20] : memref<16x64xf32, #tpu.memory_space<vmem>>, vector<16x64xf32>
      %c0_21 = arith.constant 0 : index
      %c0_22 = arith.constant 0 : index
      %32 = vector.load %arg6[%c0_21, %c0_22] : memref<1x64xf32, #tpu.memory_space<vmem>>, vector<1x64xf32>
      %33 = vector.broadcast %32 : vector<1x64xf32> to vector<16x64xf32>
      %34 = arith.addf %31, %33 : vector<16x64xf32>
      %c0_23 = arith.constant 0 : index
      %c0_24 = arith.constant 0 : index
      %35 = vector.load %arg2[%c0_23, %c0_24] : memref<16x64xf32, #tpu.memory_space<vmem>>, vector<16x64xf32>
      %36 = arith.addf %34, %35 : vector<16x64xf32>
      %cst_25 = arith.constant dense<0.000000e+00> : vector<16xf32>
      %37 = vector.multi_reduction <add>, %36, %cst_25 [1] : vector<16x64xf32> to vector<16xf32>
      %38 = vector.shape_cast %37 : vector<16xf32> to vector<16x1xf32>
      %cst_26 = arith.constant 6.400000e+01 : f32
      %39 = vector.broadcast %cst_26 : f32 to vector<16x1xf32>
      %40 = arith.divf %38, %39 : vector<16x1xf32>
      %41 = vector.broadcast %40 : vector<16x1xf32> to vector<16x64xf32>
      %42 = arith.subf %36, %41 : vector<16x64xf32>
      %43 = arith.mulf %42, %42 : vector<16x64xf32>
      %cst_27 = arith.constant dense<0.000000e+00> : vector<16xf32>
      %44 = vector.multi_reduction <add>, %43, %cst_27 [1] : vector<16x64xf32> to vector<16xf32>
      %45 = vector.shape_cast %44 : vector<16xf32> to vector<16x1xf32>
      %cst_28 = arith.constant 6.400000e+01 : f32
      %46 = vector.broadcast %cst_28 : f32 to vector<16x1xf32>
      %47 = arith.divf %45, %46 : vector<16x1xf32>
      %cst_29 = arith.constant 9.99999974E-6 : f32
      %48 = vector.broadcast %cst_29 : f32 to vector<16x1xf32>
      %49 = arith.addf %47, %48 : vector<16x1xf32>
      %50 = math.rsqrt %49 : vector<16x1xf32>
      %51 = vector.broadcast %50 : vector<16x1xf32> to vector<16x64xf32>
      %52 = arith.mulf %42, %51 : vector<16x64xf32>
      %c0_30 = arith.constant 0 : index
      %c0_31 = arith.constant 0 : index
      %53 = vector.load %arg7[%c0_30, %c0_31] : memref<1x64xf32, #tpu.memory_space<vmem>>, vector<1x64xf32>
      %54 = vector.broadcast %53 : vector<1x64xf32> to vector<16x64xf32>
      %55 = arith.mulf %52, %54 : vector<16x64xf32>
      %c0_32 = arith.constant 0 : index
      %c0_33 = arith.constant 0 : index
      %56 = vector.load %arg8[%c0_32, %c0_33] : memref<1x64xf32, #tpu.memory_space<vmem>>, vector<1x64xf32>
      %57 = vector.broadcast %56 : vector<1x64xf32> to vector<16x64xf32>
      %58 = arith.addf %55, %57 : vector<16x64xf32>
      %c0_34 = arith.constant 0 : index
      %c0_35 = arith.constant 0 : index
      %59 = vector.load %arg9[%c0_34, %c0_35] : memref<16x64xf32, #tpu.memory_space<vmem>>, vector<16x64xf32>
      tpu.vector_store %arg9[%c0_34, %c0_35], %58 {strides = array<i32>} : memref<16x64xf32, #tpu.memory_space<vmem>>, vector<16x64xf32>,
    } else {
    }
    return
  }
  func.func @transform_0(%arg0: i32, %arg1: i32) -> (i32, i32) {
    %c0_i32 = arith.constant 0 : i32
    %c0_i32_0 = arith.constant 0 : i32
    return %arg0, %c0_i32 : i32, i32
  }
  func.func @transform_1(%arg0: i32, %arg1: i32) -> (i32, i32) {
    %c0_i32 = arith.constant 0 : i32
    %c0_i32_0 = arith.constant 0 : i32
    return %c0_i32, %arg1 : i32, i32
  }
  func.func @transform_2(%arg0: i32, %arg1: i32) -> (i32, i32) {
    %c0_i32 = arith.constant 0 : i32
    %c0_i32_0 = arith.constant 0 : i32
    return %c0_i32, %arg1 : i32, i32
  }
  func.func @transform_3(%arg0: i32, %arg1: i32) -> (i32, i32) {
    %c0_i32 = arith.constant 0 : i32
    %c0_i32_0 = arith.constant 0 : i32
    return %arg1, %c0_i32 : i32, i32
  }
  func.func @transform_4(%arg0: i32, %arg1: i32) -> (i32, i32) {
    %c0_i32 = arith.constant 0 : i32
    %c0_i32_0 = arith.constant 0 : i32
    %c0_i32_1 = arith.constant 0 : i32
    return %c0_i32, %c0_i32_0 : i32, i32
  }
  func.func @transform_5(%arg0: i32, %arg1: i32) -> (i32, i32) {
    %c0_i32 = arith.constant 0 : i32
    %c0_i32_0 = arith.constant 0 : i32
    %c0_i32_1 = arith.constant 0 : i32
    return %c0_i32, %c0_i32_0 : i32, i32
  }
  func.func @transform_6(%arg0: i32, %arg1: i32) -> (i32, i32) {
    %c0_i32 = arith.constant 0 : i32
    %c0_i32_0 = arith.constant 0 : i32
    %c0_i32_1 = arith.constant 0 : i32
    return %c0_i32, %c0_i32_0 : i32, i32
  }
  func.func @transform_7(%arg0: i32, %arg1: i32) -> (i32, i32) {
    %c0_i32 = arith.constant 0 : i32
    %c0_i32_0 = arith.constant 0 : i32
    return %arg0, %c0_i32 : i32, i32
  }
}

module attributes {stable_mosaic.version = 11 : i64} {
  func.func @_dense_act_kernel(%arg0: i32, %arg1: i32, %arg2: i32, %arg3: memref<2x64xf32, #tpu.memory_space<vmem>>, %arg4: memref<64x22xbf16, #tpu.memory_space<vmem>>, %arg5: memref<1x22xf32, #tpu.memory_space<vmem>>, %arg6: memref<2x22xf32, #tpu.memory_space<vmem>>, %arg7: memref<2x22xf32, #tpu.memory_space<vmem>>) attributes {dimension_semantics = [#tpu.dimension_semantics<parallel>, #tpu.dimension_semantics<parallel>, #tpu.dimension_semantics<arbitrary>], iteration_bounds = array<i64: 1, 1, 1>, scalar_prefetch = 0 : i64, scratch_operands = 1 : i64, tpu.core_type = #tpu.core_type<tc>, window_params = [{transform_indices = @transform_0, window_bounds = array<i64: 2, 64>}, {transform_indices = @transform_1, window_bounds = array<i64: 64, 22>}, {transform_indices = @transform_2, window_bounds = array<i64: 1, 22>}, {transform_indices = @transform_3, window_bounds = array<i64: 2, 22>}]} {
    %c0_i32 = arith.constant 0 : i32
    %0 = arith.cmpi eq, %arg2, %c0_i32 : i32
    %1 = arith.extui %0 : i1 to i32
    %c0_i32_0 = arith.constant 0 : i32
    %2 = arith.cmpi ne, %1, %c0_i32_0 : i32
    scf.if %2 {
      %cst_10 = arith.constant 0.000000e+00 : f32
      %13 = vector.broadcast %cst_10 : f32 to vector<2x22xf32>
      %c0_11 = arith.constant 0 : index
      %c0_12 = arith.constant 0 : index
      %14 = vector.load %arg7[%c0_11, %c0_12] : memref<2x22xf32, #tpu.memory_space<vmem>>, vector<2x22xf32>
      tpu.vector_store %arg7[%c0_11, %c0_12], %13 {strides = array<i32>} : memref<2x22xf32, #tpu.memory_space<vmem>>, vector<2x22xf32>,
    } else {
    }
    %c0 = arith.constant 0 : index
    %c0_1 = arith.constant 0 : index
    %3 = vector.load %arg7[%c0, %c0_1] : memref<2x22xf32, #tpu.memory_space<vmem>>, vector<2x22xf32>
    %c0_2 = arith.constant 0 : index
    %c0_3 = arith.constant 0 : index
    %4 = vector.load %arg3[%c0_2, %c0_3] : memref<2x64xf32, #tpu.memory_space<vmem>>, vector<2x64xf32>
    %5 = arith.truncf %4 : vector<2x64xf32> to vector<2x64xbf16>
    %c0_4 = arith.constant 0 : index
    %c0_5 = arith.constant 0 : index
    %6 = vector.load %arg4[%c0_4, %c0_5] : memref<64x22xbf16, #tpu.memory_space<vmem>>, vector<64x22xbf16>
    %cst = arith.constant dense<0.000000e+00> : vector<2x22xf32>
    %7 = tpu.matmul %5, %6, %cst {dimension_numbers = #tpu.dot_dimension_numbers<[1], [0], [0], [1], [0, 0, 1, 1], [], []>} : vector<2x64xbf16>, vector<64x22xbf16>, vector<2x22xf32> -> vector<2x22xf32>
    %8 = arith.addf %3, %7 : vector<2x22xf32>
    %c0_6 = arith.constant 0 : index
    %c0_7 = arith.constant 0 : index
    %9 = vector.load %arg7[%c0_6, %c0_7] : memref<2x22xf32, #tpu.memory_space<vmem>>, vector<2x22xf32>
    tpu.vector_store %arg7[%c0_6, %c0_7], %8 {strides = array<i32>} : memref<2x22xf32, #tpu.memory_space<vmem>>, vector<2x22xf32>,
    %c0_i32_8 = arith.constant 0 : i32
    %10 = arith.cmpi eq, %arg2, %c0_i32_8 : i32
    %11 = arith.extui %10 : i1 to i32
    %c0_i32_9 = arith.constant 0 : i32
    %12 = arith.cmpi ne, %11, %c0_i32_9 : i32
    scf.if %12 {
      %c0_10 = arith.constant 0 : index
      %c0_11 = arith.constant 0 : index
      %13 = vector.load %arg7[%c0_10, %c0_11] : memref<2x22xf32, #tpu.memory_space<vmem>>, vector<2x22xf32>
      %c0_12 = arith.constant 0 : index
      %c0_13 = arith.constant 0 : index
      %14 = vector.load %arg5[%c0_12, %c0_13] : memref<1x22xf32, #tpu.memory_space<vmem>>, vector<1x22xf32>
      %15 = vector.broadcast %14 : vector<1x22xf32> to vector<2x22xf32>
      %16 = arith.addf %13, %15 : vector<2x22xf32>
      %c0_14 = arith.constant 0 : index
      %c0_15 = arith.constant 0 : index
      %17 = vector.load %arg6[%c0_14, %c0_15] : memref<2x22xf32, #tpu.memory_space<vmem>>, vector<2x22xf32>
      tpu.vector_store %arg6[%c0_14, %c0_15], %16 {strides = array<i32>} : memref<2x22xf32, #tpu.memory_space<vmem>>, vector<2x22xf32>,
    } else {
    }
    return
  }
  func.func @transform_0(%arg0: i32, %arg1: i32, %arg2: i32) -> (i32, i32) {
    %c0_i32 = arith.constant 0 : i32
    return %arg0, %arg2 : i32, i32
  }
  func.func @transform_1(%arg0: i32, %arg1: i32, %arg2: i32) -> (i32, i32) {
    %c0_i32 = arith.constant 0 : i32
    return %arg2, %arg1 : i32, i32
  }
  func.func @transform_2(%arg0: i32, %arg1: i32, %arg2: i32) -> (i32, i32) {
    %c0_i32 = arith.constant 0 : i32
    %c0_i32_0 = arith.constant 0 : i32
    return %c0_i32, %arg1 : i32, i32
  }
  func.func @transform_3(%arg0: i32, %arg1: i32, %arg2: i32) -> (i32, i32) {
    %c0_i32 = arith.constant 0 : i32
    return %arg0, %arg1 : i32, i32
  }
}

module attributes {stable_mosaic.version = 11 : i64} {
  func.func @_loss_kernel(%arg0: i32, %arg1: memref<2x22xf32, #tpu.memory_space<vmem>>, %arg2: memref<2x22xf32, #tpu.memory_space<vmem>>, %arg3: memref<1x1xf32, #tpu.memory_space<vmem>>) attributes {dimension_semantics = [#tpu.dimension_semantics<arbitrary>], iteration_bounds = array<i64: 1>, scalar_prefetch = 0 : i64, scratch_operands = 0 : i64, tpu.core_type = #tpu.core_type<tc>, window_params = [{pipeline_mode = #tpu.pipeline_mode<synchronous>, transform_indices = @transform_0, window_bounds = array<i64: 2, 22>}, {pipeline_mode = #tpu.pipeline_mode<synchronous>, transform_indices = @transform_1, window_bounds = array<i64: 2, 22>}, {pipeline_mode = #tpu.pipeline_mode<synchronous>, transform_indices = @transform_2, window_bounds = array<i64: 1, 1>}]} {
    %c0 = arith.constant 0 : index
    %c0_0 = arith.constant 0 : index
    %0 = vector.load %arg1[%c0, %c0_0] : memref<2x22xf32, #tpu.memory_space<vmem>>, vector<2x22xf32>
    %c0_1 = arith.constant 0 : index
    %c0_2 = arith.constant 0 : index
    %1 = vector.load %arg2[%c0_1, %c0_2] : memref<2x22xf32, #tpu.memory_space<vmem>>, vector<2x22xf32>
    %cst = arith.constant 0.000000e+00 : f32
    %2 = vector.broadcast %cst : f32 to vector<2x22xf32>
    %3 = arith.maximumf %0, %2 : vector<2x22xf32>
    %4 = arith.mulf %0, %1 : vector<2x22xf32>
    %5 = arith.subf %3, %4 : vector<2x22xf32>
    %6 = math.absf %0 : vector<2x22xf32>
    %cst_3 = arith.constant 0.000000e+00 : f32
    %7 = vector.broadcast %cst_3 : f32 to vector<2x22xf32>
    %8 = arith.subf %7, %6 : vector<2x22xf32>
    %9 = math.exp %8 : vector<2x22xf32>
    %cst_4 = arith.constant 1.000000e+00 : f32
    %10 = vector.broadcast %cst_4 : f32 to vector<2x22xf32>
    %11 = arith.addf %10, %9 : vector<2x22xf32>
    %12 = math.log %11 : vector<2x22xf32>
    %13 = arith.addf %5, %12 : vector<2x22xf32>
    %14 = vector.shape_cast %13 : vector<2x22xf32> to vector<1x2x22xf32>
    %cst_5 = arith.constant dense<0.000000e+00> : vector<1xf32>
    %15 = vector.multi_reduction <add>, %14, %cst_5 [1, 2] : vector<1x2x22xf32> to vector<1xf32>
    %16 = vector.shape_cast %15 : vector<1xf32> to vector<1x1x1xf32>
    %17 = vector.extract %16[0, 0, 0] : f32 from vector<1x1x1xf32>
    %cst_6 = arith.constant 4.400000e+01 : f32
    %18 = arith.divf %17, %cst_6 : f32
    %19 = vector.broadcast %18 : f32 to vector<2x22xf32>
    %20 = arith.mulf %19, %1 : vector<2x22xf32>
    %cst_7 = arith.constant 1.000000e+01 : f32
    %21 = vector.broadcast %cst_7 : f32 to vector<2x22xf32>
    %22 = arith.mulf %20, %21 : vector<2x22xf32>
    %cst_8 = arith.constant 1.000000e+00 : f32
    %23 = vector.broadcast %cst_8 : f32 to vector<2x22xf32>
    %24 = arith.subf %23, %1 : vector<2x22xf32>
    %25 = vector.broadcast %18 : f32 to vector<2x22xf32>
    %26 = arith.mulf %25, %24 : vector<2x22xf32>
    %cst_9 = arith.constant 1.000000e+00 : f32
    %27 = vector.broadcast %cst_9 : f32 to vector<2x22xf32>
    %28 = arith.mulf %26, %27 : vector<2x22xf32>
    %29 = vector.shape_cast %22 : vector<2x22xf32> to vector<1x2x22xf32>
    %cst_10 = arith.constant dense<0.000000e+00> : vector<1xf32>
    %30 = vector.multi_reduction <add>, %29, %cst_10 [1, 2] : vector<1x2x22xf32> to vector<1xf32>
    %31 = vector.shape_cast %30 : vector<1xf32> to vector<1x1x1xf32>
    %32 = vector.extract %31[0, 0, 0] : f32 from vector<1x1x1xf32>
    %cst_11 = arith.constant 4.400000e+01 : f32
    %33 = arith.divf %32, %cst_11 : f32
    %34 = vector.shape_cast %28 : vector<2x22xf32> to vector<1x2x22xf32>
    %cst_12 = arith.constant dense<0.000000e+00> : vector<1xf32>
    %35 = vector.multi_reduction <add>, %34, %cst_12 [1, 2] : vector<1x2x22xf32> to vector<1xf32>
    %36 = vector.shape_cast %35 : vector<1xf32> to vector<1x1x1xf32>
    %37 = vector.extract %36[0, 0, 0] : f32 from vector<1x1x1xf32>
    %cst_13 = arith.constant 4.400000e+01 : f32
    %38 = arith.divf %37, %cst_13 : f32
    %39 = arith.addf %33, %38 : f32
    %cst_14 = arith.constant 1.000000e+00 : f32
    %40 = vector.broadcast %cst_14 : f32 to vector<1x1xf32>
    %41 = vector.broadcast %39 : f32 to vector<1x1xf32>
    %42 = arith.mulf %41, %40 : vector<1x1xf32>
    %c0_15 = arith.constant 0 : index
    %c0_16 = arith.constant 0 : index
    %43 = vector.load %arg3[%c0_15, %c0_16] : memref<1x1xf32, #tpu.memory_space<vmem>>, vector<1x1xf32>
    tpu.vector_store %arg3[%c0_15, %c0_16], %42 {strides = array<i32>} : memref<1x1xf32, #tpu.memory_space<vmem>>, vector<1x1xf32>,
    return
  }
  func.func @transform_0(%arg0: i32) -> (i32, i32) {
    %c0_i32 = arith.constant 0 : i32
    %c0_i32_0 = arith.constant 0 : i32
    %c0_i32_1 = arith.constant 0 : i32
    return %c0_i32, %c0_i32_0 : i32, i32
  }
  func.func @transform_1(%arg0: i32) -> (i32, i32) {
    %c0_i32 = arith.constant 0 : i32
    %c0_i32_0 = arith.constant 0 : i32
    %c0_i32_1 = arith.constant 0 : i32
    return %c0_i32, %c0_i32_0 : i32, i32
  }
  func.func @transform_2(%arg0: i32) -> (i32, i32) {
    %c0_i32 = arith.constant 0 : i32
    %c0_i32_0 = arith.constant 0 : i32
    %c0_i32_1 = arith.constant 0 : i32
    return %c0_i32, %c0_i32_0 : i32, i32
  }
}

module attributes {stable_mosaic.version = 11 : i64} {
  func.func @_dense_act_kernel(%arg0: i32, %arg1: i32, %arg2: i32, %arg3: memref<2x64xf32, #tpu.memory_space<vmem>>, %arg4: memref<64x64xbf16, #tpu.memory_space<vmem>>, %arg5: memref<1x64xf32, #tpu.memory_space<vmem>>, %arg6: memref<2x64xf32, #tpu.memory_space<vmem>>, %arg7: memref<2x64xf32, #tpu.memory_space<vmem>>) attributes {dimension_semantics = [#tpu.dimension_semantics<parallel>, #tpu.dimension_semantics<parallel>, #tpu.dimension_semantics<arbitrary>], iteration_bounds = array<i64: 1, 1, 1>, scalar_prefetch = 0 : i64, scratch_operands = 1 : i64, tpu.core_type = #tpu.core_type<tc>, window_params = [{transform_indices = @transform_0, window_bounds = array<i64: 2, 64>}, {transform_indices = @transform_1, window_bounds = array<i64: 64, 64>}, {transform_indices = @transform_2, window_bounds = array<i64: 1, 64>}, {transform_indices = @transform_3, window_bounds = array<i64: 2, 64>}]} {
    %c0_i32 = arith.constant 0 : i32
    %0 = arith.cmpi eq, %arg2, %c0_i32 : i32
    %1 = arith.extui %0 : i1 to i32
    %c0_i32_0 = arith.constant 0 : i32
    %2 = arith.cmpi ne, %1, %c0_i32_0 : i32
    scf.if %2 {
      %cst_10 = arith.constant 0.000000e+00 : f32
      %13 = vector.broadcast %cst_10 : f32 to vector<2x64xf32>
      %c0_11 = arith.constant 0 : index
      %c0_12 = arith.constant 0 : index
      %14 = vector.load %arg7[%c0_11, %c0_12] : memref<2x64xf32, #tpu.memory_space<vmem>>, vector<2x64xf32>
      tpu.vector_store %arg7[%c0_11, %c0_12], %13 {strides = array<i32>} : memref<2x64xf32, #tpu.memory_space<vmem>>, vector<2x64xf32>,
    } else {
    }
    %c0 = arith.constant 0 : index
    %c0_1 = arith.constant 0 : index
    %3 = vector.load %arg7[%c0, %c0_1] : memref<2x64xf32, #tpu.memory_space<vmem>>, vector<2x64xf32>
    %c0_2 = arith.constant 0 : index
    %c0_3 = arith.constant 0 : index
    %4 = vector.load %arg3[%c0_2, %c0_3] : memref<2x64xf32, #tpu.memory_space<vmem>>, vector<2x64xf32>
    %5 = arith.truncf %4 : vector<2x64xf32> to vector<2x64xbf16>
    %c0_4 = arith.constant 0 : index
    %c0_5 = arith.constant 0 : index
    %6 = vector.load %arg4[%c0_4, %c0_5] : memref<64x64xbf16, #tpu.memory_space<vmem>>, vector<64x64xbf16>
    %cst = arith.constant dense<0.000000e+00> : vector<2x64xf32>
    %7 = tpu.matmul %5, %6, %cst {dimension_numbers = #tpu.dot_dimension_numbers<[1], [0], [0], [1], [0, 0, 1, 1], [], []>} : vector<2x64xbf16>, vector<64x64xbf16>, vector<2x64xf32> -> vector<2x64xf32>
    %8 = arith.addf %3, %7 : vector<2x64xf32>
    %c0_6 = arith.constant 0 : index
    %c0_7 = arith.constant 0 : index
    %9 = vector.load %arg7[%c0_6, %c0_7] : memref<2x64xf32, #tpu.memory_space<vmem>>, vector<2x64xf32>
    tpu.vector_store %arg7[%c0_6, %c0_7], %8 {strides = array<i32>} : memref<2x64xf32, #tpu.memory_space<vmem>>, vector<2x64xf32>,
    %c0_i32_8 = arith.constant 0 : i32
    %10 = arith.cmpi eq, %arg2, %c0_i32_8 : i32
    %11 = arith.extui %10 : i1 to i32
    %c0_i32_9 = arith.constant 0 : i32
    %12 = arith.cmpi ne, %11, %c0_i32_9 : i32
    scf.if %12 {
      %c0_10 = arith.constant 0 : index
      %c0_11 = arith.constant 0 : index
      %13 = vector.load %arg7[%c0_10, %c0_11] : memref<2x64xf32, #tpu.memory_space<vmem>>, vector<2x64xf32>
      %c0_12 = arith.constant 0 : index
      %c0_13 = arith.constant 0 : index
      %14 = vector.load %arg5[%c0_12, %c0_13] : memref<1x64xf32, #tpu.memory_space<vmem>>, vector<1x64xf32>
      %15 = vector.broadcast %14 : vector<1x64xf32> to vector<2x64xf32>
      %16 = arith.addf %13, %15 : vector<2x64xf32>
      %17 = math.tanh %16 : vector<2x64xf32>
      %c0_14 = arith.constant 0 : index
      %c0_15 = arith.constant 0 : index
      %18 = vector.load %arg6[%c0_14, %c0_15] : memref<2x64xf32, #tpu.memory_space<vmem>>, vector<2x64xf32>
      tpu.vector_store %arg6[%c0_14, %c0_15], %17 {strides = array<i32>} : memref<2x64xf32, #tpu.memory_space<vmem>>, vector<2x64xf32>,
    } else {
    }
    return
  }
  func.func @transform_0(%arg0: i32, %arg1: i32, %arg2: i32) -> (i32, i32) {
    %c0_i32 = arith.constant 0 : i32
    return %arg0, %arg2 : i32, i32
  }
  func.func @transform_1(%arg0: i32, %arg1: i32, %arg2: i32) -> (i32, i32) {
    %c0_i32 = arith.constant 0 : i32
    return %arg2, %arg1 : i32, i32
  }
  func.func @transform_2(%arg0: i32, %arg1: i32, %arg2: i32) -> (i32, i32) {
    %c0_i32 = arith.constant 0 : i32
    %c0_i32_0 = arith.constant 0 : i32
    return %c0_i32, %arg1 : i32, i32
  }
  func.func @transform_3(%arg0: i32, %arg1: i32, %arg2: i32) -> (i32, i32) {
    %c0_i32 = arith.constant 0 : i32
    return %arg0, %arg1 : i32, i32
  }
}

</mosaic_0001>

<bundles_post_ra>
// kernel: roberta_forward.12
= control target key start
LH: loop header
LB: loop body
LE: loop exit
PB: predicated region body
PF: predicated region fallthrough
CT: control target
= control target key end

     0   :  { %vm16_vm0 = vcmask 523264   ;;  %s118_s0 = inlined_call_operand.vmem [shape: f32[16,64], index: 0, kind: input, shape index: {}]   ;;  %s119_s1 = inlined_call_operand.vmem [shape: f32[1,64], index: 1, kind: input, shape index: {}]   ;;  %s120_s2 = inlined_call_operand.vmem [shape: f32[1,64], index: 2, kind: input, shape index: {}]   ;;  %s121_s3 = inlined_call_operand.vmem [shape: f32[16,64], index: 3, kind: output, shape index: {}]  }
   0x1   :  { %v14_v0 = vld [vmem:[%s118_s0] sm:$0xff]  ;;  %v15_v1 = vld [vmem:[%s118_s0 + $0x8] sm:$0xff] }
   0x2   :  { %v17_v2 = vsel %vm16_vm0, %v14_v0, 0.0  ;;  %v20_v3 = vsel %vm16_vm0, %v15_v1, 0.0  ;;  %v68_v21 = vld [vmem:[%s119_s1] ss:$0 sm:$0xff] }
   0x3   :  { %18 = vadd.xlane.f32.xlu0 %v17_v2  ;;  %v69_v23 = vld [vmem:[%s120_s2] ss:$0 sm:$0xff] }
   0x7   :  { %21 = vadd.xlane.f32.xlu0 %v20_v3 }
  0x90   :  { %v19_v4 = vpop.xlane.xlu0 %18 }
  0x91   :  { %v24_v5 = vmul.f32 0.015625, %v19_v4 }
  0x93   :  { %v26_v6 = vsub.f32 %v14_v0, %v24_v5 }
  0x94   :  { %v22_v7 = vpop.xlane.xlu0 %21 }
  0x95   :  { %v25_v8 = vmul.f32 0.015625, %v22_v7  ;;  %v28_v9 = vmul.f32 %v26_v6, %v26_v6 }
  0x97   :  { %v27_v10 = vsub.f32 %v15_v1, %v25_v8  ;;  %v30_v11 = vsel %vm16_vm0, %v28_v9, 0.0 }
  0x98   :  { %31 = vadd.xlane.f32.xlu1 %v30_v11 }
  0x99   :  { %v29_v12 = vmul.f32 %v27_v10, %v27_v10 }
  0x9b   :  { %v33_v13 = vsel %vm16_vm0, %v29_v12, 0.0 }
  0x9c   :  { %34 = vadd.xlane.f32.xlu1 %v33_v13 }
 0x125   :  { %v32_v14 = vpop.xlane.xlu1 %31 }
 0x126   :  { %v36_v15 = vmul.f32 0.015625, %v32_v14 }
 0x128   :  { %v38_v16 = vadd.f32 1e-05, %v36_v15 }
 0x129   :  { %v35_v17 = vpop.xlane.xlu1 %34 }
 0x12a   :  { %70 = vrsqrt.f32 %v38_v16  ;;  %v37_v18 = vmul.f32 0.015625, %v35_v17 }
 0x12c   :  { %v39_v19 = vadd.f32 1e-05, %v37_v18 }
 0x12e   :  { %72 = vrsqrt.f32 %v39_v19 }
 0x134   :  { %v71_v20 = vpop.eup %70 }
 0x135   :  { %v42_v22 = vmul.f32 %v71_v20, %v26_v6 }
 0x137   :  { %v51_v24 = vmul.f32 %v68_v21, %v42_v22 }
 0x138   :  { %v73_v25 = vpop.eup %72 }
 0x139   :  { %v60_v26 = vadd.f32 %v69_v23, %v51_v24  ;;  %v43_v27 = vmul.f32 %v73_v25, %v27_v10 }
 0x13b   :  { %62 = vst.msk [vmem:[%s121_s3] sm:$0xff] %vm16_vm0, %v60_v26  ;;  %v52_v28 = vmul.f32 %v68_v21, %v43_v27 }
 0x13d   :  { %v61_v29 = vadd.f32 %v69_v23, %v52_v28 }
 0x13f   :  { %63 = vst.msk [vmem:[%s121_s3 + $0x8] sm:$0xff] %vm16_vm0, %v61_v29 }

// kernel: roberta_forward.13
= control target key start
LH: loop header
LB: loop body
LE: loop exit
PB: predicated region body
PF: predicated region fallthrough
CT: control target
= control target key end

     0   :  { %vm20_vm0 = vcmask 523264   ;;  %v205_v1 = vmov 0   ;;  %v206_v2 = vmov 0.0   ;;  %v143_v13 = vlaneseq  ;;  %s271_s1 = inlined_call_operand.vmem [shape: bf16[64,192], index: 1, kind: input, shape index: {}]   ;;  %s272_s0 = inlined_call_operand.vmem [shape: f32[16,64], index: 0, kind: input, shape index: {}]   ;;  %s273_s2 = inlined_call_operand.vmem [shape: f32[1,192], index: 2, kind: input, shape index: {}]   ;;  %s274_s3 = inlined_call_operand.vmem [shape: bf16[16,192], index: 3, kind: output, shape index: {}]  }
   0x1   :  { %v193_v0 = vld [vmem:[%s271_s1 + $0x4] ss:$8 sps:$4 sm:$0xff]   ;;  %115 = vmatprep.mubr.bf16.mxu0 %v205_v1  ;;  %21 = vst.msk [vmem:[#allocation2 + $0x8] sm:$0xff] %vm20_vm0, %v206_v2  ;;  %23 = vst.msk [vmem:[#allocation2 + $0x18] sm:$0xff] %vm20_vm0, %v206_v2  ;;  %v195_v3 = vld [vmem:[%s271_s1] ss:$8 sps:$4 sm:$0xff]  }
   0x2   :  { %83 = vmatprep.subr.bf16.mxu0 %v193_v0  ;;  %v196_v4 = vld [vmem:[%s271_s1 + $0x14] ss:$8 sps:$4 sm:$0xff]   ;;  %v198_v5 = vld [vmem:[%s271_s1 + $0x10] ss:$8 sps:$4 sm:$0xff]   ;;  %v199_v6 = vld [vmem:[%s271_s1 + $0x24] ss:$8 sps:$4 sm:$0xff]  }
   0x3   :  { %84 = vmatpush1.bf16.msra.mxu0 %v195_v3  ;;  %v201_v7 = vld [vmem:[%s271_s1 + $0x20] ss:$8 sps:$4 sm:$0xff]   ;;  %v202_v8 = vld [vmem:[%s271_s1 + $0x34] ss:$8 sps:$4 sm:$0xff]   ;;  %v204_v9 = vld [vmem:[%s271_s1 + $0x30] ss:$8 sps:$4 sm:$0xff]  }
   0x4   :  { %85 = vmatprep.subr.bf16.mxu0 %v196_v4  ;;  %v28_v10 = vld [vmem:[%s272_s0] sm:$0xff]  ;;  %v29_v11 = vld [vmem:[%s272_s0 + $0x8] sm:$0xff]  ;;  %v144_v16 = vshrl.u32 %v143_v13, 7  ;;  %vm169_vm1 = vcmask 1043456   ;;  %vm170_vm2 = vcmask 523268  }
   0x5   :  { %v30_v12 = vpack.c.bf16 %v29_v11, %v28_v10  ;;  %v141_v25 = vld [vmem:[%s273_s2] sm:$0x3]  ;;  %vm171_vm3 = vmor %vm170_vm2, %vm169_vm1 }
   0x6   :  { %v145_v22 = vsub.s32 0, %v144_v16  ;;  %v149_v23 = vsub.s32 1, %v144_v16 }
   0x7   :  { %86 = vmatpush1.bf16.msra.mxu0 %v198_v5 }
   0x8   :  { %87 = vmatprep.subr.bf16.mxu0 %v199_v6  ;;  %v25_v14 = vld [vmem:[#allocation2 + $0x8] sm:$0xff]  ;;  %v27_v18 = vld [vmem:[#allocation2 + $0x18] sm:$0xff]  ;;  %v146_v26 = vrot.slane %v141_v25, %v145_v22  ;;  %v150_v27 = vrot.slane %v141_v25, %v149_v23 }
   0xb   :  { %88 = vmatpush1.bf16.msra.mxu0 %v201_v7 }
   0xc   :  { %89 = vmatprep.subr.bf16.mxu0 %v202_v8 }
   0xf   :  { %90 = vmatpush1.bf16.msra.mxu0 %v204_v9 }
  0x12   :  { %186 = vmatmul.mubr.msk.bf16.vlgmr.msra.gmra.mrb[0].mxu0 %vm20_vm0, %v30_v12 }
  0xe5   :  { %v117_v15 = vpop.f32.mrb[0].mxu0 }
  0xe6   :  { %v119_v17 = vpop.f32.mrb[1].mxu0  ;;  %v153_v29 = vadd.f32 %v146_v26, %v117_v15 }
  0xe7   :  { %v127_v19 = vadd.f32 %v119_v17, %v25_v14  ;;  %v121_v20 = vpop.f32.mrb[2].mxu0 }
  0xe8   :  { %v123_v21 = vpop.f32.mrb[3].mxu0  ;;  %v155_v33 = vadd.f32 %v146_v26, %v121_v20 }
  0xe9   :  { %131 = vst.msk [vmem:[#allocation2 + $0x8] sm:$0xff] %vm20_vm0, %v127_v19  ;;  %v129_v24 = vadd.f32 %v123_v21, %v27_v18 }
  0xeb   :  { %133 = vst.msk [vmem:[#allocation2 + $0x18] sm:$0xff] %vm20_vm0, %v129_v24 }
  0xf0   :  { %v138_v28 = vld [vmem:[#allocation2 + $0x8] sm:$0xff] }
  0xf1   :  { %v154_v30 = vadd.f32 %v150_v27, %v138_v28 }
  0xf2   :  { %v140_v31 = vld [vmem:[#allocation2 + $0x18] sm:$0xff] }
  0xf3   :  { %v189_v32 = vpack.c.bf16 %v154_v30, %v153_v29  ;;  %v156_v34 = vadd.f32 %v150_v27, %v140_v31 }
  0xf5   :  { %172 = vst.msk [vmem:[%s274_s3] sm:$0xff] %vm171_vm3, %v189_v32  ;;  %v190_v35 = vpack.c.bf16 %v156_v34, %v155_v33 }
  0xf7   :  { %173 = vst.msk [vmem:[%s274_s3 + $0x8] sm:$0xff] %vm171_vm3, %v190_v35 }

// kernel: roberta_forward.15
= control target key start
LH: loop header
LB: loop body
LE: loop exit
PB: predicated region body
PF: predicated region fallthrough
CT: control target
= control target key end

     0   :  { %vm28_vm0 = vcmask 523264   ;;  %v227_v0 = vmov 0.0   ;;  %vm228_vm1 = vmmov 0   ;;  %s311_s1 = inlined_call_operand.vmem [shape: bf16[64,64], index: 1, kind: input, shape index: {}]   ;;  %s312_s0 = inlined_call_operand.vmem [shape: bf16[16,64], index: 0, kind: input, shape index: {}]   ;;  %s313_s2 = inlined_call_operand.vmem [shape: f32[1,64], index: 2, kind: input, shape index: {}]   ;;  %s314_s3 = inlined_call_operand.vmem [shape: f32[16,64], index: 3, kind: input, shape index: {}]   ;;  %s315_s4 = inlined_call_operand.vmem [shape: f32[1,64], index: 4, kind: input, shape index: {}]   ;;  %s316_s5 = inlined_call_operand.vmem [shape: f32[1,64], index: 5, kind: input, shape index: {}]   ;;  %s317_s6 = inlined_call_operand.vmem [shape: f32[16,64], index: 6, kind: output, shape index: {}]  }
   0x1   :  { %204 = vmatprep.subr.bf16.mxu0 %v227_v0  ;;  %v218_v1 = vld [vmem:[%s311_s1] sm:$0xff]   ;;  %212 = vmatprep.mubr.msk.bf16.mxu0 %vm228_vm1, %v227_v0  ;;  %29 = vst.msk [vmem:[#allocation2] sm:$0xff] %vm28_vm0, %v227_v0  ;;  %30 = vst.msk [vmem:[#allocation2 + $0x8] sm:$0xff] %vm28_vm0, %v227_v0  ;;  %v219_v2 = vld [vmem:[%s311_s1 + $0x8] sm:$0xff]  }
   0x2   :  { %205 = vmatpush3.bf16.msra.mxu0 %v218_v1  ;;  %v220_v3 = vld [vmem:[%s311_s1 + $0x10] sm:$0xff]   ;;  %v221_v4 = vld [vmem:[%s311_s1 + $0x18] sm:$0xff]   ;;  %v222_v5 = vld [vmem:[%s312_s0] sm:$0xff]  }
   0x3   :  { %206 = vmatprep.subr.bf16.mxu0 %v227_v0  ;;  %v196_v14 = vld [vmem:[%s313_s2] ss:$0 sm:$0xff]  ;;  %v136_v19 = vld [vmem:[%s314_s3 + $0x8] sm:$0xff] }
   0x4   :  { %v135_v16 = vld [vmem:[%s314_s3] sm:$0xff] }
   0x5   :  { %v197_v42 = vld [vmem:[%s315_s4] ss:$0 sm:$0xff] }
   0x6   :  { %207 = vmatpush3.bf16.msra.mxu0 %v219_v2  ;;  %v198_v44 = vld [vmem:[%s316_s5] ss:$0 sm:$0xff] }
   0x7   :  { %208 = vmatprep.subr.bf16.mxu0 %v227_v0 }
   0x8   :  { %v31_v6 = vld [vmem:[#allocation2] sm:$0xff]  ;;  %v32_v8 = vld [vmem:[#allocation2 + $0x8] sm:$0xff] }
   0xa   :  { %209 = vmatpush3.bf16.msra.mxu0 %v220_v3 }
   0xb   :  { %210 = vmatprep.subr.bf16.mxu0 %v227_v0 }
   0xe   :  { %211 = vmatpush3.bf16.msra.mxu0 %v221_v4 }
  0x11   :  { %213 = vmatmul.mubr.msk.bf16.vlgmr.msra.gmra.mrb[0].mxu0 %vm28_vm0, %v222_v5 }
  0xe4   :  { %v110_v7 = vpop.f32.mrb[0].mxu0 }
  0xe5   :  { %v117_v9 = vadd.f32 %v110_v7, %v31_v6  ;;  %v214_v10 = vpop.f32.mrb[1].mxu0 }
  0xe6   :  { %v113_v11 = vpop.f32.mrb[2].mxu0 }
  0xe7   :  { %119 = vst.msk [vmem:[#allocation2] sm:$0xff] %vm28_vm0, %v117_v9  ;;  %v118_v12 = vadd.f32 %v113_v11, %v32_v8  ;;  %v215_v13 = vpop.f32.mrb[3].mxu0 }
  0xe9   :  { %120 = vst.msk [vmem:[#allocation2 + $0x8] sm:$0xff] %vm28_vm0, %v118_v12 }
  0xee   :  { %v124_v15 = vld [vmem:[#allocation2] sm:$0xff] }
  0xef   :  { %v133_v17 = vadd.f32 %v196_v14, %v124_v15 }
  0xf0   :  { %v125_v18 = vld [vmem:[#allocation2 + $0x8] sm:$0xff] }
  0xf1   :  { %v137_v20 = vadd.f32 %v135_v16, %v133_v17  ;;  %v134_v21 = vadd.f32 %v196_v14, %v125_v18 }
  0xf3   :  { %v139_v22 = vsel %vm28_vm0, %v137_v20, 0.0  ;;  %v138_v23 = vadd.f32 %v136_v19, %v134_v21 }
  0xf4   :  { %140 = vadd.xlane.f32.xlu0 %v139_v22 }
  0xf5   :  { %v142_v24 = vsel %vm28_vm0, %v138_v23, 0.0 }
  0xf8   :  { %143 = vadd.xlane.f32.xlu0 %v142_v24 }
 0x181   :  { %v141_v25 = vpop.xlane.xlu0 %140 }
 0x182   :  { %v146_v26 = vmul.f32 0.015625, %v141_v25 }
 0x184   :  { %v148_v27 = vsub.f32 %v137_v20, %v146_v26 }
 0x185   :  { %v144_v28 = vpop.xlane.xlu0 %143 }
 0x186   :  { %v147_v29 = vmul.f32 0.015625, %v144_v28  ;;  %v150_v30 = vmul.f32 %v148_v27, %v148_v27 }
 0x188   :  { %v149_v31 = vsub.f32 %v138_v23, %v147_v29  ;;  %v152_v32 = vsel %vm28_vm0, %v150_v30, 0.0 }
 0x189   :  { %153 = vadd.xlane.f32.xlu1 %v152_v32 }
 0x18a   :  { %v151_v33 = vmul.f32 %v149_v31, %v149_v31 }
 0x18c   :  { %v155_v34 = vsel %vm28_vm0, %v151_v33, 0.0 }
 0x18d   :  { %156 = vadd.xlane.f32.xlu1 %v155_v34 }
 0x216   :  { %v154_v35 = vpop.xlane.xlu1 %153 }
 0x217   :  { %v158_v36 = vmul.f32 0.015625, %v154_v35 }
 0x219   :  { %v160_v37 = vadd.f32 1e-05, %v158_v36 }
 0x21a   :  { %v157_v38 = vpop.xlane.xlu1 %156 }
 0x21b   :  { %223 = vrsqrt.f32 %v160_v37  ;;  %v159_v39 = vmul.f32 0.015625, %v157_v38 }
 0x21d   :  { %v161_v40 = vadd.f32 1e-05, %v159_v39 }
 0x21f   :  { %225 = vrsqrt.f32 %v161_v40 }
 0x225   :  { %v224_v41 = vpop.eup %223 }
 0x226   :  { %v164_v43 = vmul.f32 %v224_v41, %v148_v27 }
 0x228   :  { %v173_v45 = vmul.f32 %v197_v42, %v164_v43 }
 0x229   :  { %v226_v46 = vpop.eup %225 }
 0x22a   :  { %v182_v47 = vadd.f32 %v198_v44, %v173_v45  ;;  %v165_v48 = vmul.f32 %v226_v46, %v149_v31 }
 0x22c   :  { %184 = vst.msk [vmem:[%s317_s6] sm:$0xff] %vm28_vm0, %v182_v47  ;;  %v174_v49 = vmul.f32 %v197_v42, %v165_v48 }
 0x22e   :  { %v183_v50 = vadd.f32 %v198_v44, %v174_v49 }
 0x230   :  { %185 = vst.msk [vmem:[%s317_s6 + $0x8] sm:$0xff] %vm28_vm0, %v183_v50 }

// kernel: roberta_forward.14
= control target key start
LH: loop header
LB: loop body
LE: loop exit
PB: predicated region body
PF: predicated region fallthrough
CT: control target
= control target key end

     0   :  { %s902_s9 = smov 0   ;;  %s1009_s0 = inlined_call_operand.vmem [shape: bf16[2,8,192], index: 0, kind: input, shape index: {}]   ;;  %s1010_s1 = inlined_call_operand.vmem [shape: f32[2,1,8], index: 1, kind: input, shape index: {}]   ;;  %s1011_s2 = inlined_call_operand.vmem [shape: bf16[2,8,64], index: 2, kind: output, shape index: {}]  }
   0x1 LB: > { %s734_s10 = sadd.s32 4294967295, %s876_s9   ;;  %p738_p0 = scmp.ge.s32.totalorder %s876_s9, 1  ;;  %s876_s9 = sphi %s902_s9, %s12_s9  }
   0x2   : > { %p120_p1 = scmp.lt.s32.totalorder %s876_s9, 3 }
   0x4   : > { %p121_p2 = pnand %p738_p0, %p120_p1 }
   0x5   : > { %p144_p3 = scmp.lt.s32.totalorder (!%p121_p2), %s734_s10, 1  ;;  %v878_v0 = vmov (!%p121_p2), 0.0   ;;  %vm879_vm0 = vmmov (!%p121_p2), 0   ;;  %s880_s15 = smov (!%p121_p2), 64   ;;  %vm167_vm1 = vcmask (!%p121_p2), 130048   ;;  %v216_v6 = vlaneseq (!%p121_p2) }
   0x6   : > { %124 = sbr.rel (%p121_p2) target bundleno = 1560 (0x618), region = 28  ;;  %782 = vmatprep.subr.bf16.mxu0 (!%p121_p2), %v878_v0  ;;  %784 = vmatprep.mubr.msk.bf16.mxu0 (!%p121_p2), %vm879_vm0, %v878_v0  ;;  %s881_s16 = smov (!%p121_p2), 48   ;;  %vm222_vm2 = vcmask (!%p121_p2), 64512   ;;  %vm238_vm3 = vcmask (!%p121_p2), 1043456   ;;  %vm283_vm4 = vcmask (!%p121_p2), 125952   ;;  %vm412_vm5 = vcmask (!%p121_p2), 257152  }
   0x7   : > { %788 = vmatprep.subr.bf16.mxu1 (!%p121_p2), %v878_v0  ;;  %790 = vmatprep.mubr.msk.bf16.mxu1 (!%p121_p2), %vm879_vm0, %v878_v0  ;;  %v217_v9 = vshrl.u32 (!%p121_p2), %v216_v6, 7  ;;  %s882_s20 = smov (!%p121_p2), 80   ;;  %s883_s21 = smov (!%p121_p2), 112   ;;  %vm541_vm6 = vcmask (!%p121_p2), 388352   ;;  %vm670_vm7 = vcmask (!%p121_p2), 519552  }
   0x8   : > { %s884_s22 = smov (!%p121_p2), 32   ;;  %s885_s23 = smov (!%p121_p2), 96  }
   0x9   : > { %v218_v11 = vsub.s32 (!%p121_p2), 0, %v217_v9  ;;  %s886_s24 = smov (!%p121_p2), 16  }
   0xd   : > { %s1013_s10 = smov (!%p144_p3, %s734_s10), 1 }
   0xe   : > { %s762_s11 = sshll.u32 %s1013_s10, 3  ;;  %s151_s19 = scalar_lea.vmem %s1010_s1, %s1013_s10 }
   0xf   : > { %s922_s14 = scalar_lea.vmem %s1009_s0, %s762_s11  ;;  %v157_v7 = vld [vmem:[%s151_s19] sm:$0x1]  ;;  %s741_s25 = sshll.u32 %s1013_s10, 2 }
  0x10   : > { %v160_v1 = vld [vmem:[%s922_s14] sm:$0xf]  ;;  %v158_v8 = vsub.f32 1.0, %v157_v7  ;;  %v161_v26 = vld [vmem:[%s922_s14 + $0x4] sm:$0xf]  ;;  %s970_s28 = scalar_lea.vmem %s1011_s2, %s741_s25 }
  0x11   : > { %v742_v2 = vcombine.low %v160_v1, %v160_v1  ;;  %v848_v5 = vld [vmem:[%s922_s14] ss:$0 sps:$4 sm:$0xff]   ;;  %v240_v27 = vsel %vm238_vm3, %v161_v26, 0  ;;  %v852_v6 = vld [vmem:[%s922_s14 + $0x4] ss:$0 sps:$4 sm:$0xff]  }
  0x12   : > { %292 = vrot.lane.b32.xlu1 %v848_v5, %s881_s16  ;;  %v159_v10 = vmul.f32 -1e+09, %v158_v8  ;;  %v850_v20 = vld [vmem:[%s922_s14] ss:$0 sps:$4 sm:$0xff]   ;;  %789 = vmatpush3.bf16.msra.mxu1 %v240_v27 }
  0x13   : > { %165 = vrot.lane.b32.xlu0 %v742_v2, %s880_s15  ;;  %v849_v28 = vld [vmem:[%s922_s14] ss:$0 sps:$4 sm:$0xff]   ;;  %794 = vmatprep.subr.bf16.mxu1 %v878_v0 }
  0x14   : > { %v936_v12 = vrot.slane %v159_v10, %v218_v11 }
  0x84   : > { %v293_v29 = vpop.permute.xlu1 %292 }
  0x85   : > { %v166_v3 = vpop.permute.xlu0 %165  ;;  %v298_v36 = vsel %vm167_vm1, %v293_v29, 0 }
  0x86   : > { %v172_v4 = vsel %vm167_vm1, %v166_v3, 0 }
  0x87   : > { %783 = vmatpush3.bf16.xpose.msra.mxu0 %v172_v4 }
  0x88   : > { %800 = vmatprep.subr.bf16.mxu0 %v878_v0 }
  0x8e   : > { %785 = vmatmul.mubr.msk.bf16.vlgmr.msra.gmra.mrb[0].mxu0 %vm167_vm1, %v160_v1 }
  0x8f   : > { %802 = vmatprep.mubr.msk.bf16.mxu0 %vm879_vm0, %v878_v0 }
 0x161   : > { %v208_v13 = vpop.f32.mrb[0].mxu0 }
 0x162   : > { %v214_v14 = vmul.f32 0.25, %v208_v13  ;;  %v786_v15 = vpop.f32.mrb[1].mxu0 }
 0x163   : > { %v211_v16 = vpop.f32.mrb[2].mxu0 }
 0x164   : > { %v787_v17 = vpop.f32.mrb[3].mxu0  ;;  %v221_v18 = vadd.f32 %v936_v12, %v214_v14 }
 0x166   : > { %v223_v19 = vsel %vm222_vm2, %v221_v18, -inf }
 0x167   : > { %224 = vmax.xlane.f32.xlu0 %v223_v19 }
 0x17d   : > { %548 = vrot.lane.b32.xlu0 %v850_v20, %s882_s20 }
 0x1f4   : > { %v225_v21 = vpop.xlane.xlu0 %224 }
 0x1f5   : > { %v226_v22 = vsub.f32 %v221_v18, %v225_v21 }
 0x1f7   : > { %v227_v23 = vmul.f32 1.442695, %v226_v22 }
 0x1f8   : > { %v549_v41 = vpop.permute.xlu0 %548 }
 0x1f9   : > { %854 = vpow2.f32 %v227_v23 }
 0x203   : > { %v855_v24 = vpop.eup %854 }
 0x204   : > { %v229_v25 = vsel %vm222_vm2, %v855_v24, 0.0 }
 0x205   : > { %230 = vadd.xlane.f32.xlu1 %v229_v25 }
 0x216   : > { %290 = vrot.lane.b32.xlu1 %v848_v5, %s883_s21  ;;  %v851_v5 = vld [vmem:[%s922_s14 + $0x4] ss:$0 sps:$4 sm:$0xff]  }
 0x21a   : > { %421 = vrot.lane.b32.xlu1 %v849_v28, %s884_s22 }
 0x21e   : > { %419 = vrot.lane.b32.xlu1 %v849_v28, %s885_s23 }
 0x222   : > { %550 = vrot.lane.b32.xlu1 %v850_v20, %s886_s24 }
 0x292   : > { %v231_v30 = vpop.xlane.xlu1 %230 }
 0x293   : > { %856 = vrcp.f32 %v231_v30 }
 0x296   : > { %v291_v31 = vpop.permute.xlu1 %290 }
 0x29a   : > { %v422_v35 = vpop.permute.xlu1 %421 }
 0x29b   : > { %v427_v38 = vsel %vm167_vm1, %v422_v35, 0 }
 0x29d   : > { %v857_v32 = vpop.eup %856 }
 0x29e   : > { %v233_v33 = vmul.f32 %v857_v32, %v855_v24  ;;  %v420_v37 = vpop.permute.xlu1 %419  ;;  %v853_v24 = vld [vmem:[%s922_s14 + $0x4] ss:$0 sps:$4 sm:$0xff]  }
 0x2a0   : > { %v234_v34 = vpack.c.bf16 %v233_v33, %v233_v33 }
 0x2a2   : > { %791 = vmatmul.mubr.msk.bf16.vlgmr.msra.gmra.mrb[0].mxu1 %vm222_vm2, %v234_v34  ;;  %v551_v39 = vpop.permute.xlu1 %550 }
 0x2a3   : > { %795 = vmatpush3.bf16.xpose.msra.mxu1 %v298_v36  ;;  %796 = vmatprep.mubr.msk.bf16.mxu1 %vm879_vm0, %v878_v0  ;;  %v556_v40 = vsel %vm167_vm1, %v551_v39, 0 }
 0x2a4   : > { %806 = vmatprep.subr.bf16.mxu1 %v878_v0 }
 0x2aa   : > { %797 = vmatmul.mubr.msk.bf16.vlgmr.msra.gmra.mrb[4].mxu1 %vm167_vm1, %v291_v31 }
 0x2ab   : > { %807 = vmatpush3.bf16.xpose.msra.mxu1 %v427_v38  ;;  %808 = vmatprep.mubr.msk.bf16.mxu1 %vm879_vm0, %v878_v0 }
 0x2ac   : > { %818 = vmatprep.subr.bf16.mxu1 %v878_v0 }
 0x2b2   : > { %809 = vmatmul.mubr.msk.bf16.vlgmr.msra.gmra.mrb[8].mxu1 %vm167_vm1, %v420_v37 }
 0x2b3   : > { %819 = vmatpush3.bf16.xpose.msra.mxu1 %v556_v40  ;;  %820 = vmatprep.mubr.msk.bf16.mxu1 %vm879_vm0, %v878_v0 }
 0x2ba   : > { %821 = vmatmul.mubr.msk.bf16.vlgmr.msra.gmra.mrb[12].mxu1 %vm167_vm1, %v549_v41 }
 0x375   : > { %v276_v42 = vpop.f32.mrb[0].mxu1 }
 0x376   : > { %v282_v43 = vpack.c.bf16 %v276_v42, %v276_v42  ;;  %v792_v44 = vpop.f32.mrb[1].mxu1 }
 0x377   : > { %v279_v45 = vpop.f32.mrb[2].mxu1 }
 0x378   : > { %284 = vst.msk [vmem:[%s970_s28] sm:$0xf] %vm283_vm4, %v282_v43  ;;  %v793_v46 = vpop.f32.mrb[3].mxu1 }
 0x37d   : > { %v334_v47 = vpop.f32.mrb[4].mxu1 }
 0x37e   : > { %v340_v48 = vmul.f32 0.25, %v334_v47  ;;  %v798_v49 = vpop.f32.mrb[5].mxu1 }
 0x37f   : > { %v337_v50 = vpop.f32.mrb[6].mxu1 }
 0x380   : > { %v799_v51 = vpop.f32.mrb[7].mxu1  ;;  %v341_v52 = vadd.f32 %v340_v48, %v936_v12 }
 0x382   : > { %v342_v53 = vsel %vm222_vm2, %v341_v52, -inf }
 0x383   : > { %343 = vmax.xlane.f32.xlu1 %v342_v53 }
 0x385   : > { %v463_v54 = vpop.f32.mrb[8].mxu1 }
 0x386   : > { %v469_v55 = vmul.f32 0.25, %v463_v54  ;;  %v810_v56 = vpop.f32.mrb[9].mxu1 }
 0x387   : > { %v466_v57 = vpop.f32.mrb[10].mxu1 }
 0x388   : > { %v811_v58 = vpop.f32.mrb[11].mxu1  ;;  %v470_v59 = vadd.f32 %v469_v55, %v936_v12 }
 0x38a   : > { %v471_v60 = vsel %vm222_vm2, %v470_v59, -inf }
 0x38b   : > { %472 = vmax.xlane.f32.xlu0 %v471_v60 }
 0x38d   : > { %v592_v61 = vpop.f32.mrb[12].mxu1 }
 0x38e   : > { %v598_v62 = vmul.f32 0.25, %v592_v61  ;;  %v822_v63 = vpop.f32.mrb[13].mxu1 }
 0x38f   : > { %v595_v1 = vpop.f32.mrb[14].mxu1 }
 0x390   : > { %v823_v2 = vpop.f32.mrb[15].mxu1  ;;  %v599_v3 = vadd.f32 %v598_v62, %v936_v12 }
 0x392   : > { %v600_v4 = vsel %vm222_vm2, %v599_v3, -inf }
 0x393   : > { %601 = vmax.xlane.f32.xlu1 %v600_v4 }
 0x3a1   : > { %357 = vrot.lane.b32.xlu0 %v852_v6, %s883_s21 }
 0x3a4   : > { %486 = vrot.lane.b32.xlu1 %v851_v5, %s885_s23 }
 0x410   : > { %v344_v7 = vpop.xlane.xlu1 %343 }
 0x411   : > { %v345_v8 = vsub.f32 %v341_v52, %v344_v7 }
 0x413   : > { %v346_v9 = vmul.f32 1.442695, %v345_v8 }
 0x415   : > { %858 = vpow2.f32 %v346_v9 }
 0x418   : > { %v473_v10 = vpop.xlane.xlu0 %472 }
 0x419   : > { %v474_v11 = vsub.f32 %v470_v59, %v473_v10 }
 0x41b   : > { %v475_v13 = vmul.f32 1.442695, %v474_v11 }
 0x41c   : > { %v358_v22 = vpop.permute.xlu0 %357 }
 0x41d   : > { %860 = vpow2.f32 %v475_v13  ;;  %v363_v23 = vsel %vm238_vm3, %v358_v22, 0 }
 0x41e   : > { %801 = vmatpush3.bf16.msra.mxu0 %v363_v23 }
 0x41f   : > { %v859_v14 = vpop.eup %858  ;;  %812 = vmatprep.subr.bf16.mxu0 %v878_v0 }
 0x420   : > { %v602_v15 = vpop.xlane.xlu1 %601  ;;  %v348_v12 = vsel %vm222_vm2, %v859_v14, 0.0 }
 0x421   : > { %v603_v16 = vsub.f32 %v599_v3, %v602_v15  ;;  %349 = vadd.xlane.f32.xlu1 %v348_v12 }
 0x423   : > { %v604_v17 = vmul.f32 1.442695, %v603_v16 }
 0x424   : > { %v487_v25 = vpop.permute.xlu1 %486 }
 0x425   : > { %862 = vpow2.f32 %v604_v17  ;;  %v492_v31 = vsel %vm238_vm3, %v487_v25, 0 }
 0x427   : > { %v861_v18 = vpop.eup %860 }
 0x428   : > { %v477_v19 = vsel %vm222_vm2, %v861_v18, 0.0 }
 0x429   : > { %478 = vadd.xlane.f32.xlu1 %v477_v19 }
 0x42f   : > { %v863_v20 = vpop.eup %862 }
 0x430   : > { %v606_v21 = vsel %vm222_vm2, %v863_v20, 0.0 }
 0x431   : > { %607 = vadd.xlane.f32.xlu1 %v606_v21 }
 0x442   : > { %615 = vrot.lane.b32.xlu1 %v853_v24, %s882_s20 }
 0x4ae   : > { %v350_v26 = vpop.xlane.xlu1 %349 }
 0x4af   : > { %864 = vrcp.f32 %v350_v26 }
 0x4b6   : > { %v479_v27 = vpop.xlane.xlu1 %478 }
 0x4b7   : > { %866 = vrcp.f32 %v479_v27 }
 0x4b9   : > { %v865_v28 = vpop.eup %864 }
 0x4ba   : > { %v352_v29 = vmul.f32 %v865_v28, %v859_v14 }
 0x4bc   : > { %v353_v30 = vpack.c.bf16 %v352_v29, %v352_v29 }
 0x4be   : > { %v608_v32 = vpop.xlane.xlu1 %607  ;;  %803 = vmatmul.mubr.msk.bf16.vlgmr.msra.gmra.mrb[4].mxu0 %vm222_vm2, %v353_v30 }
 0x4bf   : > { %868 = vrcp.f32 %v608_v32  ;;  %813 = vmatpush3.bf16.msra.mxu0 %v492_v31  ;;  %814 = vmatprep.mubr.msk.bf16.mxu0 %vm879_vm0, %v878_v0 }
 0x4c0   : > { %824 = vmatprep.subr.bf16.mxu0 %v878_v0 }
 0x4c1   : > { %v867_v33 = vpop.eup %866 }
 0x4c2   : > { %v481_v34 = vmul.f32 %v867_v33, %v861_v18  ;;  %v616_v35 = vpop.permute.xlu1 %615 }
 0x4c3   : > { %v621_v36 = vsel %vm238_vm3, %v616_v35, 0 }
 0x4c4   : > { %v482_v37 = vpack.c.bf16 %v481_v34, %v481_v34 }
 0x4c6   : > { %815 = vmatmul.mubr.msk.bf16.vlgmr.msra.gmra.mrb[8].mxu0 %vm222_vm2, %v482_v37 }
 0x4c7   : > { %825 = vmatpush3.bf16.msra.mxu0 %v621_v36  ;;  %826 = vmatprep.mubr.msk.bf16.mxu0 %vm879_vm0, %v878_v0 }
 0x4c9   : > { %v869_v38 = vpop.eup %868 }
 0x4ca   : > { %v610_v39 = vmul.f32 %v869_v38, %v863_v20 }
 0x4cc   : > { %v611_v40 = vpack.c.bf16 %v610_v39, %v610_v39 }
 0x4ce   : > { %827 = vmatmul.mubr.msk.bf16.vlgmr.msra.gmra.mrb[12].mxu0 %vm222_vm2, %v611_v40 }
 0x591   : > { %v399_v41 = vpop.f32.mrb[4].mxu0 }
 0x592   : > { %v763_v42 = vpack.c.bf16 %v399_v41, %v399_v41  ;;  %v804_v43 = vpop.f32.mrb[5].mxu0 }
 0x593   : > { %v402_v44 = vpop.f32.mrb[6].mxu0 }
 0x594   : > { %409 = vrot.lane.b32.xlu0 %v763_v42, %s886_s24  ;;  %v805_v45 = vpop.f32.mrb[7].mxu0 }
 0x599   : > { %v528_v46 = vpop.f32.mrb[8].mxu0 }
 0x59a   : > { %v764_v47 = vpack.c.bf16 %v528_v46, %v528_v46  ;;  %v816_v48 = vpop.f32.mrb[9].mxu0 }
 0x59b   : > { %v531_v49 = vpop.f32.mrb[10].mxu0 }
 0x59c   : > { %538 = vrot.lane.b32.xlu1 %v764_v47, %s884_s22  ;;  %v817_v0 = vpop.f32.mrb[11].mxu0 }
 0x5a1   : > { %v657_v50 = vpop.f32.mrb[12].mxu0 }
 0x5a2   : > { %v765_v51 = vpack.c.bf16 %v657_v50, %v657_v50  ;;  %v828_v52 = vpop.f32.mrb[13].mxu0 }
 0x5a3   : > { %v660_v53 = vpop.f32.mrb[14].mxu0 }
 0x5a4   : > { %667 = vrot.lane.b32.xlu0 %v765_v51, %s881_s16  ;;  %v829_v54 = vpop.f32.mrb[15].mxu0 }
 0x606   : > { %v410_v55 = vpop.permute.xlu0 %409 }
 0x607   : > { %413 = vst.msk [vmem:[%s970_s28] sm:$0xf] %vm412_vm5, %v410_v55 }
 0x60e   : > { %v539_v56 = vpop.permute.xlu1 %538 }
 0x60f   : > { %542 = vst.msk [vmem:[%s970_s28] sm:$0xf] %vm541_vm6, %v539_v56 }
 0x616   : > { %v668_v57 = vpop.permute.xlu0 %667 }
 0x617   : > { %671 = vst.msk [vmem:[%s970_s28] sm:$0xf] %vm670_vm7, %v668_v57 }
 0x618 PF: > { %s12_s9 = sadd.s32 1, %s876_s9  }
 0x619   : > { %p9_p4 = scmp.ge.s32.totalorder %s12_s9, 4  }
 0x61b   :  { %11 = sbr.rel (!%p9_p4) target bundleno = 1 (0x1), region = 61 }

// kernel: roberta_forward.22
= control target key start
LH: loop header
LB: loop body
LE: loop exit
PB: predicated region body
PF: predicated region fallthrough
CT: control target
= control target key end

     0   :  { %vm19_vm0 = vcmask 173056   ;;  %v149_v0 = vmov 0.0   ;;  %vm150_vm1 = vmmov 0   ;;  %vm56_vm2 = vcmask 523264   ;;  %s195_s1 = inlined_call_operand.vmem [shape: bf16[64,22], index: 1, kind: input, shape index: {}]   ;;  %s196_s0 = inlined_call_operand.vmem [shape: f32[2,64], index: 0, kind: input, shape index: {}]   ;;  %s197_s2 = inlined_call_operand.vmem [shape: f32[1,22], index: 2, kind: input, shape index: {}]   ;;  %s198_s3 = inlined_call_operand.vmem [shape: f32[2,22], index: 3, kind: output, shape index: {}]  }
   0x1   :  { %131 = vmatprep.subr.bf16.mxu0 %v149_v0  ;;  %v145_v1 = vld [vmem:[%s195_s1] sm:$0xff]   ;;  %139 = vmatprep.mubr.msk.bf16.mxu0 %vm150_vm1, %v149_v0  ;;  %20 = vst.msk [vmem:[#allocation2] sm:$0x3] %vm19_vm0, %v149_v0  ;;  %v146_v2 = vld [vmem:[%s195_s1 + $0x8] sm:$0xff]   ;;  %v147_v3 = vld [vmem:[%s195_s1 + $0x10] sm:$0xff]  }
   0x2   :  { %132 = vmatpush3.bf16.msra.mxu0 %v145_v1  ;;  %v148_v4 = vld [vmem:[%s195_s1 + $0x18] sm:$0xff]   ;;  %v22_v5 = vld [vmem:[%s196_s0] sm:$0x3] }
   0x3   :  { %133 = vmatprep.subr.bf16.mxu0 %v149_v0  ;;  %v23_v6 = vpack.c.bf16 %v22_v5, %v22_v5  ;;  %v125_v13 = vld [vmem:[%s197_s2] ss:$0 sm:$0xff] }
   0x6   :  { %134 = vmatpush3.bf16.msra.mxu0 %v146_v2 }
   0x7   :  { %135 = vmatprep.subr.bf16.mxu0 %v149_v0 }
   0x8   :  { %v21_v7 = vld [vmem:[#allocation2] sm:$0x3] }
   0xa   :  { %136 = vmatpush3.bf16.msra.mxu0 %v147_v3 }
   0xb   :  { %137 = vmatprep.subr.bf16.mxu0 %v149_v0 }
   0xe   :  { %138 = vmatpush3.bf16.msra.mxu0 %v148_v4 }
  0x11   :  { %140 = vmatmul.mubr.msk.bf16.vlgmr.msra.gmra.mrb[0].mxu0 %vm56_vm2, %v23_v6 }
  0xe4   :  { %v94_v8 = vpop.f32.mrb[0].mxu0 }
  0xe5   :  { %v100_v9 = vadd.f32 %v94_v8, %v21_v7  ;;  %v141_v10 = vpop.f32.mrb[1].mxu0 }
  0xe6   :  { %v97_v11 = vpop.f32.mrb[2].mxu0 }
  0xe7   :  { %102 = vst.msk [vmem:[#allocation2] sm:$0x3] %vm19_vm0, %v100_v9  ;;  %v142_v12 = vpop.f32.mrb[3].mxu0 }
  0xee   :  { %v106_v14 = vld [vmem:[#allocation2] sm:$0x3] }
  0xef   :  { %v114_v15 = vadd.f32 %v125_v13, %v106_v14 }
  0xf1   :  { %115 = vst.msk [vmem:[%s198_s3] sm:$0x3] %vm19_vm0, %v114_v15 }

// kernel: roberta_forward.16
= control target key start
LH: loop header
LB: loop body
LE: loop exit
PB: predicated region body
PF: predicated region fallthrough
CT: control target
= control target key end

     0   :  { %v520_v1 = vmov 0   ;;  %vm31_vm0 = vcmask 523264   ;;  %v49_v29 = vlaneseq  ;;  %s678_s1 = inlined_call_operand.vmem [shape: bf16[64,256], index: 1, kind: input, shape index: {}]   ;;  %s679_s0 = inlined_call_operand.vmem [shape: f32[16,64], index: 0, kind: input, shape index: {}]   ;;  %s680_s3 = inlined_call_operand.vmem [shape: bf16[256,64], index: 3, kind: input, shape index: {}]   ;;  %s681_s2 = inlined_call_operand.vmem [shape: f32[1,256], index: 2, kind: input, shape index: {}]   ;;  %s682_s4 = inlined_call_operand.vmem [shape: f32[1,64], index: 4, kind: input, shape index: {}]   ;;  %s683_s5 = inlined_call_operand.vmem [shape: f32[1,64], index: 5, kind: input, shape index: {}]   ;;  %s684_s6 = inlined_call_operand.vmem [shape: f32[1,64], index: 6, kind: input, shape index: {}]   ;;  %s685_s7 = inlined_call_operand.vmem [shape: f32[16,64], index: 7, kind: output, shape index: {}]  }
   0x1   :  { %v480_v0 = vld [vmem:[%s678_s1 + $0x4] ss:$8 sps:$4 sm:$0xff]   ;;  %135 = vmatprep.mubr.bf16.mxu0 %v520_v1  ;;  %v482_v2 = vld [vmem:[%s678_s1] ss:$8 sps:$4 sm:$0xff]   ;;  %v483_v3 = vld [vmem:[%s678_s1 + $0x14] ss:$8 sps:$4 sm:$0xff]  }
   0x2   :  { %103 = vmatprep.subr.bf16.mxu0 %v480_v0  ;;  %v485_v4 = vld [vmem:[%s678_s1 + $0x10] ss:$8 sps:$4 sm:$0xff]   ;;  %v486_v5 = vld [vmem:[%s678_s1 + $0x24] ss:$8 sps:$4 sm:$0xff]   ;;  %v488_v9 = vld [vmem:[%s678_s1 + $0x20] ss:$8 sps:$4 sm:$0xff]  }
   0x3   :  { %104 = vmatpush1.bf16.msra.mxu0 %v482_v2  ;;  %v580_v6 = vld [vmem:[%s679_s0] sm:$0xff]  ;;  %v585_v7 = vld [vmem:[%s679_s0 + $0x8] sm:$0xff]  ;;  %v489_v10 = vld [vmem:[%s678_s1 + $0x34] ss:$8 sps:$4 sm:$0xff]   ;;  %v50_v30 = vshrl.u32 %v49_v29, 7 }
   0x4   :  { %105 = vmatprep.subr.bf16.mxu0 %v483_v3  ;;  %v36_v8 = vpack.c.bf16 %v585_v7, %v580_v6  ;;  %v491_v11 = vld [vmem:[%s678_s1 + $0x30] ss:$8 sps:$4 sm:$0xff]   ;;  %v492_v13 = vld [vmem:[%s680_s3 + $0x40] sm:$0xff]   ;;  %v494_v15 = vld [vmem:[%s680_s3 + $0x48] sm:$0xff]  }
   0x5   :  { %v493_v14 = vld [vmem:[%s680_s3] sm:$0xff]   ;;  %456 = vmatprep.subr.bf16.mxu1 %v492_v13  ;;  %v495_v16 = vld [vmem:[%s680_s3 + $0x8] sm:$0xff]   ;;  %v496_v17 = vld [vmem:[%s680_s3 + $0x50] sm:$0xff]   ;;  %v51_v31 = vsub.s32 0, %v50_v30  ;;  %v55_v33 = vsub.s32 1, %v50_v30 }
   0x6   :  { %37 = vst.msk [vmem:[#allocation3] sm:$0xff] %vm31_vm0, %v36_v8  ;;  %457 = vmatpush3.bf16.msra.mxu1 %v493_v14  ;;  %v497_v18 = vld [vmem:[%s680_s3 + $0x10] sm:$0xff]   ;;  %v498_v19 = vld [vmem:[%s680_s3 + $0x58] sm:$0xff]   ;;  %v500_v21 = vld [vmem:[%s680_s3 + $0x60] sm:$0xff]  }
   0x7   :  { %106 = vmatpush1.bf16.msra.mxu0 %v485_v4  ;;  %458 = vmatprep.subr.bf16.mxu1 %v494_v15  ;;  %v499_v20 = vld [vmem:[%s680_s3 + $0x18] sm:$0xff]   ;;  %v501_v22 = vld [vmem:[%s680_s3 + $0x20] sm:$0xff]   ;;  %v502_v23 = vld [vmem:[%s680_s3 + $0x68] sm:$0xff]  }
   0x8   :  { %107 = vmatprep.subr.bf16.mxu0 %v486_v5  ;;  %v503_v24 = vld [vmem:[%s680_s3 + $0x28] sm:$0xff]   ;;  %v504_v25 = vld [vmem:[%s680_s3 + $0x70] sm:$0xff]   ;;  %v506_v27 = vld [vmem:[%s680_s3 + $0x78] sm:$0xff]  }
   0x9   :  { %v505_v26 = vld [vmem:[%s680_s3 + $0x30] sm:$0xff]   ;;  %v507_v28 = vld [vmem:[%s680_s3 + $0x38] sm:$0xff]   ;;  %v47_v32 = vld [vmem:[%s681_s2] sm:$0x3] }
   0xa   :  { %459 = vmatpush3.bf16.msra.mxu1 %v495_v16  ;;  %v52_v34 = vrot.slane %v47_v32, %v51_v31  ;;  %v56_v35 = vrot.slane %v47_v32, %v55_v33  ;;  %v453_v31 = vld [vmem:[%s682_s4] ss:$0 sm:$0xff] }
   0xb   :  { %108 = vmatpush1.bf16.msra.mxu0 %v488_v9  ;;  %460 = vmatprep.subr.bf16.mxu1 %v496_v17 }
   0xc   :  { %109 = vmatprep.subr.bf16.mxu0 %v489_v10 }
   0xd   :  { %v38_v12 = vld [vmem:[#allocation3] sm:$0xff] }
   0xe   :  { %461 = vmatpush3.bf16.msra.mxu1 %v497_v18 }
   0xf   :  { %110 = vmatpush1.bf16.msra.mxu0 %v491_v11  ;;  %462 = vmatprep.subr.bf16.mxu1 %v498_v19 }
  0x12   :  { %436 = vmatmul.mubr.msk.bf16.vlgmr.msra.gmra.mrb[0].mxu0 %vm31_vm0, %v38_v12  ;;  %463 = vmatpush3.bf16.msra.mxu1 %v499_v20  ;;  %v521_v20 = vmov 0.0  }
  0x13   :  { %464 = vmatprep.subr.bf16.mxu1 %v500_v21  ;;  %32 = vst.msk [vmem:[#allocation2] sm:$0xff] %vm31_vm0, %v521_v20  ;;  %33 = vst.msk [vmem:[#allocation2 + $0x8] sm:$0xff] %vm31_vm0, %v521_v20 }
  0x16   :  { %465 = vmatpush3.bf16.msra.mxu1 %v501_v22 }
  0x17   :  { %466 = vmatprep.subr.bf16.mxu1 %v502_v23 }
  0x1a   :  { %467 = vmatpush3.bf16.msra.mxu1 %v503_v24  ;;  %v182_v22 = vld [vmem:[#allocation2] sm:$0xff] }
  0x1b   :  { %468 = vmatprep.subr.bf16.mxu1 %v504_v25 }
  0x1e   :  { %469 = vmatpush3.bf16.msra.mxu1 %v505_v26  ;;  %v183_v26 = vld [vmem:[#allocation2 + $0x8] sm:$0xff] }
  0x1f   :  { %470 = vmatprep.subr.bf16.mxu1 %v506_v27 }
  0x22   :  { %471 = vmatpush3.bf16.msra.mxu1 %v507_v28 }
  0xe5   :  { %v137_v36 = vpop.f32.mrb[0].mxu0 }
  0xe6   :  { %v138_v37 = vadd.f32 %v137_v36, %v52_v34  ;;  %v139_v38 = vpop.f32.mrb[1].mxu0 }
  0xe7   :  { %v140_v39 = vadd.f32 %v139_v38, %v56_v35  ;;  %v141_v40 = vpop.f32.mrb[2].mxu0 }
  0xe8   :  { %v150_v41 = vmul.f32 0.044715, %v138_v37  ;;  %v142_v42 = vadd.f32 %v141_v40, %v52_v34  ;;  %v143_v43 = vpop.f32.mrb[3].mxu0  ;;  %v146_v8 = vmul.f32 0.5, %v138_v37 }
  0xe9   :  { %v151_v44 = vmul.f32 0.044715, %v140_v39  ;;  %v144_v45 = vadd.f32 %v143_v43, %v56_v35  ;;  %v147_v11 = vmul.f32 0.5, %v140_v39 }
  0xea   :  { %v154_v46 = vmul.f32 %v150_v41, %v138_v37  ;;  %v152_v47 = vmul.f32 0.044715, %v142_v42  ;;  %v148_v9 = vmul.f32 0.5, %v142_v42 }
  0xeb   :  { %v153_v48 = vmul.f32 0.044715, %v144_v45  ;;  %v155_v49 = vmul.f32 %v151_v44, %v140_v39  ;;  %v149_v12 = vmul.f32 0.5, %v144_v45 }
  0xec   :  { %v158_v50 = vmul.f32 %v154_v46, %v138_v37  ;;  %v156_v51 = vmul.f32 %v152_v47, %v142_v42 }
  0xed   :  { %v157_v52 = vmul.f32 %v153_v48, %v144_v45  ;;  %v159_v53 = vmul.f32 %v155_v49, %v140_v39 }
  0xee   :  { %v160_v54 = vmul.f32 %v156_v51, %v142_v42  ;;  %v162_v55 = vadd.f32 %v158_v50, %v138_v37 }
  0xef   :  { %v161_v56 = vmul.f32 %v157_v52, %v144_v45  ;;  %v163_v57 = vadd.f32 %v159_v53, %v140_v39 }
  0xf0   :  { %v164_v58 = vadd.f32 %v160_v54, %v142_v42  ;;  %v166_v59 = vmul.f32 0.7978846, %v162_v55  ;;  %v454_v55 = vld [vmem:[%s683_s5] ss:$0 sm:$0xff] }
  0xf1   :  { %v165_v60 = vadd.f32 %v161_v56, %v144_v45  ;;  %v167_v61 = vmul.f32 0.7978846, %v163_v57  ;;  %v455_v57 = vld [vmem:[%s684_s6] ss:$0 sm:$0xff] }
  0xf2   :  { %v168_v62 = vmul.f32 0.7978846, %v164_v58  ;;  %508 = vtanh.f32 %v166_v59 }
  0xf3   :  { %v169_v63 = vmul.f32 0.7978846, %v165_v60  ;;  %510 = vtanh.f32 %v167_v61 }
  0xf4   :  { %512 = vtanh.f32 %v168_v62 }
  0xf5   :  { %514 = vtanh.f32 %v169_v63 }
  0xfc   :  { %v509_v0 = vpop.eup %508 }
  0xfd   :  { %v511_v1 = vpop.eup %510  ;;  %v174_v2 = vadd.f32 1.0, %v509_v0 }
  0xfe   :  { %v513_v3 = vpop.eup %512  ;;  %v175_v4 = vadd.f32 1.0, %v511_v1 }
  0xff   :  { %v515_v5 = vpop.eup %514  ;;  %v176_v10 = vadd.f32 1.0, %v513_v3  ;;  %v178_v14 = vmul.f32 %v174_v2, %v146_v8 }
 0x100   :  { %v177_v13 = vadd.f32 1.0, %v515_v5  ;;  %v179_v16 = vmul.f32 %v175_v4, %v147_v11 }
 0x101   :  { %v180_v15 = vmul.f32 %v176_v10, %v148_v9 }
 0x102   :  { %v181_v17 = vmul.f32 %v177_v13, %v149_v12 }
 0x103   :  { %v184_v18 = vpack.c.bf16 %v180_v15, %v178_v14 }
 0x104   :  { %v185_v19 = vpack.c.bf16 %v181_v17, %v179_v16 }
 0x106   :  { %346 = vmatprep.mubr.bf16.mxu1 %v185_v19 }
 0x107   :  { %347 = vmatmul.mubr.bf16.vlgmr.msra.gmra.mrb[0].mxu1 %v184_v18 }
 0x1da   :  { %v472_v21 = vpop.f32.mrb[0].mxu1 }
 0x1db   :  { %v473_v23 = vpop.f32.mrb[1].mxu1 }
 0x1dc   :  { %v474_v24 = vadd.f32 %v473_v23, %v472_v21  ;;  %v475_v25 = vpop.f32.mrb[2].mxu1 }
 0x1dd   :  { %v476_v27 = vpop.f32.mrb[3].mxu1 }
 0x1de   :  { %v355_v28 = vadd.f32 %v474_v24, %v182_v22  ;;  %v477_v29 = vadd.f32 %v476_v27, %v475_v25 }
 0x1e0   :  { %357 = vst.msk [vmem:[#allocation2] sm:$0xff] %vm31_vm0, %v355_v28  ;;  %v356_v30 = vadd.f32 %v477_v29, %v183_v26 }
 0x1e2   :  { %358 = vst.msk [vmem:[#allocation2 + $0x8] sm:$0xff] %vm31_vm0, %v356_v30 }
 0x1e7   :  { %v362_v32 = vld [vmem:[#allocation2] sm:$0xff] }
 0x1e8   :  { %v371_v33 = vadd.f32 %v453_v31, %v362_v32 }
 0x1e9   :  { %v363_v34 = vld [vmem:[#allocation2 + $0x8] sm:$0xff] }
 0x1ea   :  { %v375_v35 = vadd.f32 %v371_v33, %v580_v6  ;;  %v372_v36 = vadd.f32 %v453_v31, %v363_v34 }
 0x1ec   :  { %v377_v37 = vsel %vm31_vm0, %v375_v35, 0.0  ;;  %v376_v38 = vadd.f32 %v372_v36, %v585_v7 }
 0x1ed   :  { %378 = vadd.xlane.f32.xlu0 %v377_v37 }
 0x1ee   :  { %v380_v39 = vsel %vm31_vm0, %v376_v38, 0.0 }
 0x1f1   :  { %381 = vadd.xlane.f32.xlu0 %v380_v39 }
 0x27a   :  { %v379_v40 = vpop.xlane.xlu0 %378 }
 0x27b   :  { %v384_v41 = vmul.f32 0.015625, %v379_v40 }
 0x27d   :  { %v386_v42 = vsub.f32 %v375_v35, %v384_v41 }
 0x27e   :  { %v382_v43 = vpop.xlane.xlu0 %381 }
 0x27f   :  { %v385_v44 = vmul.f32 0.015625, %v382_v43  ;;  %v388_v45 = vmul.f32 %v386_v42, %v386_v42 }
 0x281   :  { %v387_v46 = vsub.f32 %v376_v38, %v385_v44  ;;  %v390_v47 = vsel %vm31_vm0, %v388_v45, 0.0 }
 0x282   :  { %391 = vadd.xlane.f32.xlu1 %v390_v47 }
 0x283   :  { %v389_v6 = vmul.f32 %v387_v46, %v387_v46 }
 0x285   :  { %v393_v48 = vsel %vm31_vm0, %v389_v6, 0.0 }
 0x286   :  { %394 = vadd.xlane.f32.xlu1 %v393_v48 }
 0x30f   :  { %v392_v49 = vpop.xlane.xlu1 %391 }
 0x310   :  { %v396_v7 = vmul.f32 0.015625, %v392_v49 }
 0x312   :  { %v398_v50 = vadd.f32 1e-05, %v396_v7 }
 0x313   :  { %v395_v51 = vpop.xlane.xlu1 %394 }
 0x314   :  { %516 = vrsqrt.f32 %v398_v50  ;;  %v397_v52 = vmul.f32 0.015625, %v395_v51 }
 0x316   :  { %v399_v53 = vadd.f32 1e-05, %v397_v52 }
 0x318   :  { %518 = vrsqrt.f32 %v399_v53 }
 0x31e   :  { %v517_v54 = vpop.eup %516 }
 0x31f   :  { %v402_v56 = vmul.f32 %v517_v54, %v386_v42 }
 0x321   :  { %v411_v58 = vmul.f32 %v454_v55, %v402_v56 }
 0x322   :  { %v519_v59 = vpop.eup %518 }
 0x323   :  { %v420_v60 = vadd.f32 %v455_v57, %v411_v58  ;;  %v403_v61 = vmul.f32 %v519_v59, %v387_v46 }
 0x325   :  { %422 = vst.msk [vmem:[%s685_s7] sm:$0xff] %vm31_vm0, %v420_v60  ;;  %v412_v62 = vmul.f32 %v454_v55, %v403_v61 }
 0x327   :  { %v421_v63 = vadd.f32 %v455_v57, %v412_v62 }
 0x329   :  { %423 = vst.msk [vmem:[%s685_s7 + $0x8] sm:$0xff] %vm31_vm0, %v421_v63 }

// kernel: roberta_forward.23
= control target key start
LH: loop header
LB: loop body
LE: loop exit
PB: predicated region body
PF: predicated region fallthrough
CT: control target
= control target key end

     0   :  { %s160_s0 = inlined_call_operand.vmem [shape: f32[2,22], index: 0, kind: input, shape index: {}]   ;;  %s161_s1 = inlined_call_operand.vmem [shape: f32[2,22], index: 1, kind: input, shape index: {}]   ;;  %s162_s2 = inlined_call_operand.hbm [shape: f32[1,1], index: 2, kind: output, shape index: {}]  }
   0x1   :  { %v12_v0 = vld [vmem:[%s160_s0] sm:$0x3] }
   0x2   :  { %v17_v1 = vand.u32 2147483647, %v12_v0 }
   0x3   :  { %7 = vsyncpa [#allocation3], 0  ;;  %v13_v6 = vld [vmem:[%s161_s1] sm:$0x3]  ;;  %v14_v7 = vmax.f32 %v12_v0, 0.0  ;;  %vm25_vm0 = vcmask 173056  }
   0x4   :  { %v18_v2 = vsub.f32 0.0, %v17_v1  ;;  %v15_v8 = vmul.f32 %v13_v6, %v12_v0  ;;  %v42_v21 = vsub.f32 1.0, %v13_v6  ;;  %s123_s17 = smov [#allocation2]   ;;  %vm72_vm1 = vcmask 0  }
   0x5   :  { %s80_s18 = sshll.u32 %s123_s17, 4  ;;  %s81_s18 = int_to_ptr.vmem [resolvable:$true] %s80_s18 }
   0x6   :  { %v19_v3 = vmul.f32 1.442695, %v18_v2  ;;  %v16_v9 = vsub.f32 %v14_v7, %v15_v8  ;;  %s99_s20 = scalar_lea.vmem %s81_s18, 16  ;;  %s103_s21 = scalar_lea.vmem %s81_s18, 32 }
   0x7   :  { %p100_p0 = scmp.ne.s32.totalorder %s81_s18, %s99_s20  ;;  %p104_p1 = scmp.lt.s32.totalorder %s81_s18, %s81_s18 }
   0x8   :  { %95 = vpow2.f32 %v19_v3  ;;  %p105_p2 = scmp.lt.s32.totalorder %s103_s21, %s99_s20 }
   0xa   :  { %p106_p3 = por %p105_p2, %p104_p1 }
   0xc   :  { %p107_p4 = pnand %p106_p3, %p100_p0 }
  0x12   :  { %v96_v4 = vpop.eup %95 }
  0x13   :  { %v21_v5 = vadd.f32 1.0, %v96_v4 }
  0x15   :  { %97 = vlog2.f32 %v21_v5 }
  0x1f   :  { %v98_v10 = vpop.eup %97 }
  0x20   :  { %v23_v11 = vmul.f32 0.6931472, %v98_v10 }
  0x22   :  { %v24_v12 = vadd.f32 %v23_v11, %v16_v9 }
  0x24   :  { %v26_v13 = vsel %vm25_vm0, %v24_v12, 0.0 }
  0x25   :  { %27 = vadd.xlane.f32.xlu0 %v26_v13 }
  0xb2   :  { %v28_v14 = vpop.xlane.xlu0 %27 }
  0xb3   :  { %v29_v15 = vrot.slane %v28_v14, 4 }
  0xb5   :  { %v30_v16 = vadd.f32 %v29_v15, %v28_v14 }
  0xb7   :  { %v31_v17 = vrot.slane %v30_v16, 2 }
  0xb9   :  { %v32_v18 = vadd.f32 %v31_v17, %v30_v16 }
  0xbb   :  { %v33_v19 = vrot.slane %v32_v18, 1 }
  0xbd   :  { %v34_v20 = vadd.f32 %v33_v19, %v32_v18 }
  0xbf   :  { %88 = vpush %v34_v20 }
  0xf0   :  { %s89_s0 = spop %88 }
  0xf1   :  { %s38_s1 = smul.f32 0.022727273, %s89_s0 }
  0xf3   :  { %v39_v22 = vstv %s38_s1 }
  0xf4   :  { %v40_v23 = vmul.f32 %v39_v22, %v13_v6  ;;  %v43_v24 = vmul.f32 %v42_v21, %v39_v22 }
  0xf6   :  { %v57_v25 = vsel %vm25_vm0, %v43_v24, 0.0  ;;  %v41_v26 = vmul.f32 10.0, %v40_v23 }
  0xf7   :  { %58 = vadd.xlane.f32.xlu1 %v57_v25 }
  0xf8   :  { %v44_v27 = vsel %vm25_vm0, %v41_v26, 0.0 }
  0xf9   :  { %45 = vadd.xlane.f32.xlu0 %v44_v27 }
 0x184   :  { %v59_v28 = vpop.xlane.xlu1 %58 }
 0x185   :  { %v60_v29 = vrot.slane %v59_v28, 4 }
 0x186   :  { %v46_v30 = vpop.xlane.xlu0 %45 }
 0x187   :  { %v61_v31 = vadd.f32 %v60_v29, %v59_v28  ;;  %v47_v32 = vrot.slane %v46_v30, 4 }
 0x189   :  { %v62_v33 = vrot.slane %v61_v31, 2  ;;  %v48_v34 = vadd.f32 %v47_v32, %v46_v30 }
 0x18b   :  { %v63_v35 = vadd.f32 %v62_v33, %v61_v31  ;;  %v49_v36 = vrot.slane %v48_v34, 2 }
 0x18d   :  { %v50_v37 = vadd.f32 %v49_v36, %v48_v34  ;;  %v64_v38 = vrot.slane %v63_v35, 1 }
 0x18f   :  { %v51_v39 = vrot.slane %v50_v37, 1  ;;  %v65_v41 = vadd.f32 %v64_v38, %v63_v35 }
 0x191   :  { %v52_v40 = vadd.f32 %v51_v39, %v50_v37 }
 0x193   :  { %90 = vpush %v52_v40 }
 0x194   :  { %92 = vpush %v65_v41 }
 0x1c4   :  { %s91_s13 = spop %90 }
 0x1c5   :  { %s56_s14 = smul.f32 0.022727273, %s91_s13  ;;  %s93_s15 = spop %92 }
 0x1c6   :  { %s69_s16 = smul.f32 0.022727273, %s93_s15 }
 0x1c8   :  { %s70_s19 = sadd.f32 %s69_s16, %s56_s14 }
 0x1ca   :  { %v71_v42 = vstv %s70_s19 }
 0x1cb   :  { %73 = vst.msk [vmem:[#allocation2] sm:$0x1] %vm72_vm1, %v71_v42 }
 0x1cc   :  { %110 = shalt.err (!%p107_p4)
}
 0x1cd   :  { %s111_s24 = scalar_lea.hbm %s162_s2, 16 }
 0x1ce   :  { %p112_p5 = scmp.ne.s32.totalorder %s162_s2, %s111_s24  ;;  %p115_p6 = scmp.lt.u32.totalorder %s111_s24, %s162_s2 }
 0x1d0   :  { %p117_p7 = pnand %p115_p6, %p112_p5 }
 0x1d2   :  { %120 = shalt.err (!%p117_p7)
}
 0x1d3   :  { %83 = dma.vmem_to_hbm [thread:$0]  %s81_s18, 16, %s162_s2, [#allocation3]  }
 0x1d4   :  { %121 = dma.done.wait [#allocation3], 16  }
 0x1d5   :  { %122 = vsyncadd [#allocation3], 4294967280 }
 0x1d6   :  { %87 = vsyncpa [#allocation3], 1 }

// kernel: roberta_forward.21
= control target key start
LH: loop header
LB: loop body
LE: loop exit
PB: predicated region body
PF: predicated region fallthrough
CT: control target
= control target key end

     0   :  { %vm19_vm0 = vcmask 517120   ;;  %v152_v0 = vmov 0.0   ;;  %vm153_vm1 = vmmov 0   ;;  %vm56_vm2 = vcmask 523264   ;;  %s198_s1 = inlined_call_operand.vmem [shape: bf16[64,64], index: 1, kind: input, shape index: {}]   ;;  %s199_s0 = inlined_call_operand.vmem [shape: f32[2,64], index: 0, kind: input, shape index: {}]   ;;  %s200_s2 = inlined_call_operand.vmem [shape: f32[1,64], index: 2, kind: input, shape index: {}]   ;;  %s201_s3 = inlined_call_operand.vmem [shape: f32[2,64], index: 3, kind: output, shape index: {}]  }
   0x1   :  { %132 = vmatprep.subr.bf16.mxu0 %v152_v0  ;;  %v146_v1 = vld [vmem:[%s198_s1] sm:$0xff]   ;;  %140 = vmatprep.mubr.msk.bf16.mxu0 %vm153_vm1, %v152_v0  ;;  %20 = vst.msk [vmem:[#allocation2] sm:$0x3] %vm19_vm0, %v152_v0  ;;  %v147_v2 = vld [vmem:[%s198_s1 + $0x8] sm:$0xff]   ;;  %v148_v3 = vld [vmem:[%s198_s1 + $0x10] sm:$0xff]  }
   0x2   :  { %133 = vmatpush3.bf16.msra.mxu0 %v146_v1  ;;  %v149_v4 = vld [vmem:[%s198_s1 + $0x18] sm:$0xff]   ;;  %v22_v5 = vld [vmem:[%s199_s0] sm:$0x3] }
   0x3   :  { %134 = vmatprep.subr.bf16.mxu0 %v152_v0  ;;  %v23_v6 = vpack.c.bf16 %v22_v5, %v22_v5  ;;  %v126_v13 = vld [vmem:[%s200_s2] ss:$0 sm:$0xff] }
   0x6   :  { %135 = vmatpush3.bf16.msra.mxu0 %v147_v2 }
   0x7   :  { %136 = vmatprep.subr.bf16.mxu0 %v152_v0 }
   0x8   :  { %v21_v7 = vld [vmem:[#allocation2] sm:$0x3] }
   0xa   :  { %137 = vmatpush3.bf16.msra.mxu0 %v148_v3 }
   0xb   :  { %138 = vmatprep.subr.bf16.mxu0 %v152_v0 }
   0xe   :  { %139 = vmatpush3.bf16.msra.mxu0 %v149_v4 }
  0x11   :  { %141 = vmatmul.mubr.msk.bf16.vlgmr.msra.gmra.mrb[0].mxu0 %vm56_vm2, %v23_v6 }
  0xe4   :  { %v94_v8 = vpop.f32.mrb[0].mxu0 }
  0xe5   :  { %v100_v9 = vadd.f32 %v94_v8, %v21_v7  ;;  %v142_v10 = vpop.f32.mrb[1].mxu0 }
  0xe6   :  { %v97_v11 = vpop.f32.mrb[2].mxu0 }
  0xe7   :  { %102 = vst.msk [vmem:[#allocation2] sm:$0x3] %vm19_vm0, %v100_v9  ;;  %v143_v12 = vpop.f32.mrb[3].mxu0 }
  0xee   :  { %v106_v14 = vld [vmem:[#allocation2] sm:$0x3] }
  0xef   :  { %v114_v15 = vadd.f32 %v126_v13, %v106_v14 }
  0xf1   :  { %150 = vtanh.f32 %v114_v15 }
  0xfb   :  { %v151_v16 = vpop.eup %150 }
  0xfc   :  { %116 = vst.msk [vmem:[%s201_s3] sm:$0x3] %vm19_vm0, %v151_v16 }

</bundles_post_ra>
